<compile_context>
chip_gen: v7x
topology: tpu7x:2x2x1
jax: 0.10.0
libtpu: 0.0.40
codegen_flags: <defaults>
</compile_context>

<pallas_src>
import jax
import jax.numpy as jnp
from jax import lax
from jax.experimental import pallas as pl
from jax.experimental.pallas import tpu as pltpu

EPS = 1e-6
KSIZE = 7
KHALF = KSIZE // 2


def _round_up(x, m):
    return (x + m - 1) // m * m


def _rkab_kernel(H, W, C, PAD_L, PAD_R):
    HW = H * W

    def kernel(inp_ref, ln_w_ref, ln_b_ref,
               w1_ref, b1_ref,
               w2k_ref, b2_ref,
               wsca_ref, bsca_ref,
               w3_ref, b3_ref, beta_ref,
               out_ref, pad_ref):
        x_in = inp_ref[0]                                        # (C, HW) f32, lanes = spatial

        # ---- LayerNorm2d over the channel (sublane) axis ----
        mu = jnp.mean(x_in, axis=0, keepdims=True)               # (1, HW)
        xc = x_in - mu
        var = jnp.mean(xc * xc, axis=0, keepdims=True)
        y = xc * lax.rsqrt(var + EPS)
        y = y * ln_w_ref[...] + ln_b_ref[...]                    # (C,1) broadcast over lanes

        # ---- conv1 (1x1), fused into a single MXU launch ----
        t = jnp.dot(w1_ref[...], y,
                    preferred_element_type=jnp.float32) + b1_ref[...]   # (2C, HW)
        x1 = t[:C, :]
        x2 = t[C:, :]

        # ---- conv2: depthwise 7x7, zero padding 3 ----
        # Lane-padded scratch: zero only the halo regions (interior start PAD_L is
        # a multiple of 128 -> aligned, unmasked interior store), write x2 once.
        pad_ref[:, pl.ds(0, PAD_L)] = jnp.zeros((C, PAD_L), jnp.float32)
        pad_ref[:, pl.ds(PAD_L + HW, PAD_R)] = jnp.zeros((C, PAD_R), jnp.float32)
        pad_ref[:, pl.ds(PAD_L, HW)] = x2

        w2k = w2k_ref[...]                                       # (C, 49) — loaded once
        wcoord = lax.broadcasted_iota(jnp.int32, (1, HW), 1) % W # column index per lane

        # Horizontal-wrap mask depends only on dj -> factor it out of the di sum:
        #   out = sum_dj mask(dj) * ( sum_di shift(x2, di*W+dj) * k[di,dj] )
        # Vertical out-of-range is handled by the zero halo. 7 masks / selects total,
        # 7 independent inner accumulator chains + 2 outer partials for ILP.
        acc_a = jnp.zeros((C, HW), jnp.float32)
        acc_b = jnp.zeros((C, HW), jnp.float32)
        for j in range(KSIZE):
            dj = j - KHALF
            inner = jnp.zeros((C, HW), jnp.float32)
            for i in range(KSIZE):
                di = i - KHALF
                delta = di * W + dj
                shifted = pad_ref[:, pl.ds(PAD_L + delta, HW)]   # static lane-offset slice
                tap = i * KSIZE + j
                kv = w2k[:, tap:tap + 1]                         # (C,1) per-channel tap
                inner = inner + shifted * kv
            if dj == 0:
                acc_a = acc_a + inner                            # center column: no mask
            else:
                mask = jnp.logical_and(wcoord + dj >= 0, wcoord + dj < W)
                term = jnp.where(mask, inner, 0.0)
                if j % 2 == 0:
                    acc_a = acc_a + term
                else:
                    acc_b = acc_b + term
        x2c = acc_a + acc_b + b2_ref[...]

        # ---- gate ----
        xm = x1 * x2c

        # ---- sca: global average pool (lane reduction) + tiny 1x1, then scale ----
        pooled = jnp.mean(xm, axis=-1, keepdims=True)            # (C, 1)
        s = jnp.dot(wsca_ref[...], pooled,
                    preferred_element_type=jnp.float32) + bsca_ref[...]
        xs = xm * s

        # ---- conv3 (1x1) ----
        x3 = jnp.dot(w3_ref[...], xs,
                     preferred_element_type=jnp.float32) + b3_ref[...]

        # dropout rate == 0.0 -> Identity
        # ---- residual with learnable beta (single lane-dense unmasked store) ----
        out_ref[0] = x_in + x3 * beta_ref[...]

    return kernel


def rkab_pallas(inp_nchw, params):
    """RKAB forward. inp_nchw: (N, C, H, W) float32 (PyTorch layout)."""
    ln_w, ln_b, w1, b1, w2, b2, wsca, bsca, w3, b3, beta = params
    N, C, H, W = inp_nchw.shape
    HW = H * W
    dw = 2 * C
    reach = KHALF * W + KHALF                 # max |flattened spatial shift| of the 7x7 conv
    PAD_L = _round_up(reach, 128)             # align interior so the bulk store is lane-aligned
    PAD_R = PAD_L

    # NCHW -> (N, C, H*W): pure reshape, no transpose needed in this layout.
    x = inp_nchw.reshape(N, C, HW).astype(jnp.float32)

    # 1x1 conv weights used directly as (C_out, C_in) matrices — no transposes.
    w1m = w1.reshape(dw, C)                   # (2C, C)
    b1m = b1.reshape(dw, 1)
    w2k = w2.reshape(C, KSIZE * KSIZE)        # (C, 49): column i*7+j holds tap (i,j)
    b2m = b2.reshape(C, 1)
    wscam = wsca.reshape(C, C)
    bscam = bsca.reshape(C, 1)
    w3m = w3.reshape(C, C)
    b3m = b3.reshape(C, 1)
    betam = beta.reshape(C, 1)

    args = (x, ln_w.reshape(C, 1), ln_b.reshape(C, 1),
            w1m, b1m, w2k, b2m, wscam, bscam, w3m, b3m, betam)

    def full_spec(shape):
        nd = len(shape)
        return pl.BlockSpec(shape, lambda n, _nd=nd: (0,) * _nd)

    in_specs = [pl.BlockSpec((1, C, HW), lambda n: (n, 0, 0))]
    in_specs += [full_spec(a.shape) for a in args[1:]]

    # Explicit VMEM budget: double-buffered I/O blocks + pad scratch + live temps.
    block_bytes = HW * C * 4
    est = (2 * 2 * block_bytes                      # in/out, double-buffered
           + C * (PAD_L + HW + PAD_R) * 4           # padded conv scratch
           + 24 * block_bytes                       # live register/VMEM temporaries
           + (1 << 20))                             # weights + misc headroom
    vmem_limit = int(min(max(est, 32 * 1024 * 1024), 100 * 1024 * 1024))

    # TODO(synk): for large H*W, add a spatial (row-tile + halo) grid axis with a
    # two-pass SCA mean instead of one (C, H*W) block per batch element.
    out = pl.pallas_call(
        _rkab_kernel(H, W, C, PAD_L, PAD_R),
        out_shape=jax.ShapeDtypeStruct((N, C, HW), jnp.float32),
        grid=(N,),
        in_specs=in_specs,
        out_specs=pl.BlockSpec((1, C, HW), lambda n: (n, 0, 0)),
        scratch_shapes=[pltpu.VMEM((C, PAD_L + HW + PAD_R), jnp.float32)],
        compiler_params=pltpu.CompilerParams(
            dimension_semantics=("parallel",),      # batch axis: shard across TCs (v7x)
            vmem_limit_bytes=vmem_limit),
    )(*args)

    # (N, C, H*W) -> NCHW: pure reshape.
    return out.reshape(N, C, H, W)


def rkab_reference(inp, params):
    """Pure-JAX reference matching the PyTorch module semantics (NCHW, full f32)."""
    ln_w, ln_b, w1, b1, w2, b2, wsca, bsca, w3, b3, beta = params
    N, C, H, W = inp.shape
    x = inp
    mu = jnp.mean(x, axis=1, keepdims=True)
    var = jnp.mean((x - mu) ** 2, axis=1, keepdims=True)
    y = (x - mu) / jnp.sqrt(var + EPS)
    y = ln_w.reshape(1, C, 1, 1) * y + ln_b.reshape(1, C, 1, 1)
    t = jnp.einsum('nchw,dc->ndhw', y, w1.reshape(2 * C, C),
                   precision=lax.Precision.HIGHEST) + b1.reshape(1, 2 * C, 1, 1)
    x1, x2 = t[:, :C], t[:, C:]
    x2 = lax.conv_general_dilated(
        x2, w2, window_strides=(1, 1), padding='SAME',
        feature_group_count=C,
        dimension_numbers=('NCHW', 'OIHW', 'NCHW'),
        precision=lax.Precision.HIGHEST) + b2.reshape(1, C, 1, 1)
    xm = x1 * x2
    pooled = jnp.mean(xm, axis=(2, 3), keepdims=True)
    s = jnp.einsum('ncij,dc->ndij', pooled, wsca.reshape(C, C),
                   precision=lax.Precision.HIGHEST) + bsca.reshape(1, C, 1, 1)
    xs = xm * s
    x3 = jnp.einsum('nchw,dc->ndhw', xs, w3.reshape(C, C),
                    precision=lax.Precision.HIGHEST) + b3.reshape(1, C, 1, 1)
    return inp + x3 * beta


if __name__ == "__main__":
    N, C, H, W = 2, 4, 16, 16
    dw = 2 * C

    key = jax.random.PRNGKey(0)
    ks = jax.random.split(key, 12)

    def init(k, shape, scale=0.2):
        return scale * jax.random.normal(k, shape, jnp.float32)

    # Deterministic synthetic parameter init (shapes follow RKAB.__init__).
    params = (
        1.0 + init(ks[0], (C,), 0.1),        # LayerNorm2d weight
        init(ks[1], (C,), 0.1),              # LayerNorm2d bias
        init(ks[2], (dw, C, 1, 1)),          # conv1 weight (1x1, c -> 2c)
        init(ks[3], (dw,), 0.1),             # conv1 bias
        init(ks[4], (C, 1, KSIZE, KSIZE)),   # conv2 weight (depthwise 7x7)
        init(ks[5], (C,), 0.1),              # conv2 bias
        init(ks[6], (C, C, 1, 1)),           # sca conv weight (1x1)
        init(ks[7], (C,), 0.1),              # sca conv bias
        init(ks[8], (C, C, 1, 1)),           # conv3 weight (1x1)
        init(ks[9], (C,), 0.1),              # conv3 bias
        init(ks[10], (1, C, 1, 1), 0.5),     # beta (nonzero to exercise the residual path)
    )

    inp = jax.random.normal(ks[11], (N, C, H, W), jnp.float32)

    out = rkab_pallas(inp, params)
    out = jax.block_until_ready(out)

    ref = rkab_reference(inp, params)
    assert out.shape == inp.shape
    # Kernel matmuls run at DEFAULT MXU precision (bf16 operands, f32 accumulation)
    # per the performance review; reference is full f32, hence the 2e-3 atol.
    if not bool(jnp.allclose(out, ref, atol=2e-3, rtol=1e-3)):
        raise SystemExit(f"mismatch: max abs err = {float(jnp.max(jnp.abs(out - ref)))}")

    print("KERNEL_OK")
</pallas_src>

<mosaic_0001>
module attributes {stable_mosaic.version = 11 : i64} {
  func.func @kernel(%arg0: i32, %arg1: memref<1x4x256xf32, #tpu.memory_space<vmem>>, %arg2: memref<4x1xf32, #tpu.memory_space<vmem>>, %arg3: memref<4x1xf32, #tpu.memory_space<vmem>>, %arg4: memref<8x4xf32, #tpu.memory_space<vmem>>, %arg5: memref<8x1xf32, #tpu.memory_space<vmem>>, %arg6: memref<4x49xf32, #tpu.memory_space<vmem>>, %arg7: memref<4x1xf32, #tpu.memory_space<vmem>>, %arg8: memref<4x4xf32, #tpu.memory_space<vmem>>, %arg9: memref<4x1xf32, #tpu.memory_space<vmem>>, %arg10: memref<4x4xf32, #tpu.memory_space<vmem>>, %arg11: memref<4x1xf32, #tpu.memory_space<vmem>>, %arg12: memref<4x1xf32, #tpu.memory_space<vmem>>, %arg13: memref<1x4x256xf32, #tpu.memory_space<vmem>>, %arg14: memref<4x512xf32, #tpu.memory_space<vmem>>) attributes {dimension_semantics = [#tpu.dimension_semantics<parallel>], iteration_bounds = array<i64: 2>, scalar_prefetch = 0 : i64, scratch_operands = 1 : i64, tpu.core_type = #tpu.core_type<tc>, window_params = [{transform_indices = @transform_0, window_bounds = array<i64: 1, 4, 256>}, {pipeline_mode = #tpu.pipeline_mode<synchronous>, transform_indices = @transform_1, window_bounds = array<i64: 4, 1>}, {pipeline_mode = #tpu.pipeline_mode<synchronous>, transform_indices = @transform_2, window_bounds = array<i64: 4, 1>}, {pipeline_mode = #tpu.pipeline_mode<synchronous>, transform_indices = @transform_3, window_bounds = array<i64: 8, 4>}, {pipeline_mode = #tpu.pipeline_mode<synchronous>, transform_indices = @transform_4, window_bounds = array<i64: 8, 1>}, {pipeline_mode = #tpu.pipeline_mode<synchronous>, transform_indices = @transform_5, window_bounds = array<i64: 4, 49>}, {pipeline_mode = #tpu.pipeline_mode<synchronous>, transform_indices = @transform_6, window_bounds = array<i64: 4, 1>}, {pipeline_mode = #tpu.pipeline_mode<synchronous>, transform_indices = @transform_7, window_bounds = array<i64: 4, 4>}, {pipeline_mode = #tpu.pipeline_mode<synchronous>, transform_indices = @transform_8, window_bounds = array<i64: 4, 1>}, {pipeline_mode = #tpu.pipeline_mode<synchronous>, transform_indices = @transform_9, window_bounds = array<i64: 4, 4>}, {pipeline_mode = #tpu.pipeline_mode<synchronous>, transform_indices = @transform_10, window_bounds = array<i64: 4, 1>}, {pipeline_mode = #tpu.pipeline_mode<synchronous>, transform_indices = @transform_11, window_bounds = array<i64: 4, 1>}, {transform_indices = @transform_12, window_bounds = array<i64: 1, 4, 256>}]} {
    %c0 = arith.constant 0 : index
    %c0_0 = arith.constant 0 : index
    %c0_1 = arith.constant 0 : index
    %0 = vector.load %arg1[%c0, %c0_0, %c0_1] : memref<1x4x256xf32, #tpu.memory_space<vmem>>, vector<1x4x256xf32>
    %1 = vector.shape_cast %0 : vector<1x4x256xf32> to vector<4x256xf32>
    %cst = arith.constant dense<0.000000e+00> : vector<256xf32>
    %2 = vector.multi_reduction <add>, %1, %cst [0] : vector<4x256xf32> to vector<256xf32>
    %3 = vector.shape_cast %2 : vector<256xf32> to vector<1x256xf32>
    %cst_2 = arith.constant 4.000000e+00 : f32
    %4 = vector.broadcast %cst_2 : f32 to vector<1x256xf32>
    %5 = arith.divf %3, %4 : vector<1x256xf32>
    %6 = vector.broadcast %5 : vector<1x256xf32> to vector<4x256xf32>
    %7 = arith.subf %1, %6 : vector<4x256xf32>
    %8 = arith.mulf %7, %7 : vector<4x256xf32>
    %cst_3 = arith.constant dense<0.000000e+00> : vector<256xf32>
    %9 = vector.multi_reduction <add>, %8, %cst_3 [0] : vector<4x256xf32> to vector<256xf32>
    %10 = vector.shape_cast %9 : vector<256xf32> to vector<1x256xf32>
    %cst_4 = arith.constant 4.000000e+00 : f32
    %11 = vector.broadcast %cst_4 : f32 to vector<1x256xf32>
    %12 = arith.divf %10, %11 : vector<1x256xf32>
    %cst_5 = arith.constant 9.99999997E-7 : f32
    %13 = vector.broadcast %cst_5 : f32 to vector<1x256xf32>
    %14 = arith.addf %12, %13 : vector<1x256xf32>
    %15 = math.rsqrt %14 : vector<1x256xf32>
    %16 = vector.broadcast %15 : vector<1x256xf32> to vector<4x256xf32>
    %17 = arith.mulf %7, %16 : vector<4x256xf32>
    %c0_6 = arith.constant 0 : index
    %c0_7 = arith.constant 0 : index
    %18 = vector.load %arg2[%c0_6, %c0_7] : memref<4x1xf32, #tpu.memory_space<vmem>>, vector<4x1xf32>
    %19 = vector.broadcast %18 : vector<4x1xf32> to vector<4x256xf32>
    %20 = arith.mulf %17, %19 : vector<4x256xf32>
    %c0_8 = arith.constant 0 : index
    %c0_9 = arith.constant 0 : index
    %21 = vector.load %arg3[%c0_8, %c0_9] : memref<4x1xf32, #tpu.memory_space<vmem>>, vector<4x1xf32>
    %22 = vector.broadcast %21 : vector<4x1xf32> to vector<4x256xf32>
    %23 = arith.addf %20, %22 : vector<4x256xf32>
    %c0_10 = arith.constant 0 : index
    %c0_11 = arith.constant 0 : index
    %24 = vector.load %arg4[%c0_10, %c0_11] : memref<8x4xf32, #tpu.memory_space<vmem>>, vector<8x4xf32>
    %cst_12 = arith.constant dense<0.000000e+00> : vector<8x256xf32>
    %25 = tpu.matmul %24, %23, %cst_12 {dimension_numbers = #tpu.dot_dimension_numbers<[1], [0], [0], [1], [0, 0, 1, 1], [], []>} : vector<8x4xf32>, vector<4x256xf32>, vector<8x256xf32> -> vector<8x256xf32>
    %c0_13 = arith.constant 0 : index
    %c0_14 = arith.constant 0 : index
    %26 = vector.load %arg5[%c0_13, %c0_14] : memref<8x1xf32, #tpu.memory_space<vmem>>, vector<8x1xf32>
    %27 = vector.broadcast %26 : vector<8x1xf32> to vector<8x256xf32>
    %28 = arith.addf %25, %27 : vector<8x256xf32>
    %29 = vector.extract_strided_slice %28 {offsets = [0, 0], sizes = [4, 256], strides = [1, 1]} : vector<8x256xf32> to vector<4x256xf32>
    %30 = vector.extract_strided_slice %28 {offsets = [4, 0], sizes = [4, 256], strides = [1, 1]} : vector<8x256xf32> to vector<4x256xf32>
    %cst_15 = arith.constant 0.000000e+00 : f32
    %31 = vector.broadcast %cst_15 : f32 to vector<4x128xf32>
    %c0_16 = arith.constant 0 : index
    %c0_17 = arith.constant 0 : index
    %32 = vector.load %arg14[%c0_16, %c0_17] : memref<4x512xf32, #tpu.memory_space<vmem>>, vector<4x128xf32>
    tpu.vector_store %arg14[%c0_16, %c0_17], %31 {strides = array<i32>} : memref<4x512xf32, #tpu.memory_space<vmem>>, vector<4x128xf32>,
    %cst_18 = arith.constant 0.000000e+00 : f32
    %33 = vector.broadcast %cst_18 : f32 to vector<4x128xf32>
    %c0_19 = arith.constant 0 : index
    %c384 = arith.constant 384 : index
    %34 = vector.load %arg14[%c0_19, %c384] : memref<4x512xf32, #tpu.memory_space<vmem>>, vector<4x128xf32>
    tpu.vector_store %arg14[%c0_19, %c384], %33 {strides = array<i32>} : memref<4x512xf32, #tpu.memory_space<vmem>>, vector<4x128xf32>,
    %c0_20 = arith.constant 0 : index
    %c128 = arith.constant 128 : index
    %35 = vector.load %arg14[%c0_20, %c128] : memref<4x512xf32, #tpu.memory_space<vmem>>, vector<4x256xf32>
    tpu.vector_store %arg14[%c0_20, %c128], %30 {strides = array<i32>} : memref<4x512xf32, #tpu.memory_space<vmem>>, vector<4x256xf32>,
    %c0_21 = arith.constant 0 : index
    %c0_22 = arith.constant 0 : index
    %36 = vector.load %arg6[%c0_21, %c0_22] : memref<4x49xf32, #tpu.memory_space<vmem>>, vector<4x49xf32>
    %37 = tpu.iota {dimensions = array<i32: 1>} : vector<1x256xi32>
    %c16_i32 = arith.constant 16 : i32
    %c0_i32 = arith.constant 0 : i32
    %38 = arith.cmpi eq, %c16_i32, %c0_i32 : i32
    %c1_i32 = arith.constant 1 : i32
    %39 = arith.select %38, %c1_i32, %c16_i32 : i32
    %40 = vector.broadcast %39 : i32 to vector<1x256xi32>
    %41 = arith.remsi %37, %40 : vector<1x256xi32>
    %c0_i32_23 = arith.constant 0 : i32
    %42 = vector.broadcast %c0_i32_23 : i32 to vector<1x256xi32>
    %43 = arith.cmpi ne, %41, %42 : vector<1x256xi32>
    %c0_i32_24 = arith.constant 0 : i32
    %44 = vector.broadcast %c0_i32_24 : i32 to vector<1x256xi32>
    %45 = arith.cmpi slt, %41, %44 : vector<1x256xi32>
    %c0_i32_25 = arith.constant 0 : i32
    %46 = arith.cmpi slt, %39, %c0_i32_25 : i32
    %47 = vector.broadcast %46 : i1 to vector<1x256xi1>
    %48 = vector.broadcast %47 : vector<1x256xi1> to vector<1x256xi1>
    %49 = arith.xori %45, %48 : vector<1x256xi1>
    %50 = arith.andi %49, %43 : vector<1x256xi1>
    %51 = vector.broadcast %39 : i32 to vector<1x256xi32>
    %52 = arith.addi %41, %51 : vector<1x256xi32>
    %53 = arith.select %50, %52, %41 : vector<1x256xi1>, vector<1x256xi32>
    %cst_26 = arith.constant 0.000000e+00 : f32
    %54 = vector.broadcast %cst_26 : f32 to vector<4x256xf32>
    %cst_27 = arith.constant 0.000000e+00 : f32
    %55 = vector.broadcast %cst_27 : f32 to vector<4x256xf32>
    %cst_28 = arith.constant 0.000000e+00 : f32
    %56 = vector.broadcast %cst_28 : f32 to vector<4x256xf32>
    %c0_29 = arith.constant 0 : index
    %c77 = arith.constant 77 : index
    %57 = vector.load %arg14[%c0_29, %c77] : memref<4x512xf32, #tpu.memory_space<vmem>>, vector<4x256xf32>
    %58 = vector.extract_strided_slice %36 {offsets = [0, 0], sizes = [4, 1], strides = [1, 1]} : vector<4x49xf32> to vector<4x1xf32>
    %59 = vector.broadcast %58 : vector<4x1xf32> to vector<4x256xf32>
    %60 = arith.mulf %57, %59 : vector<4x256xf32>
    %61 = arith.addf %56, %60 : vector<4x256xf32>
    %c0_30 = arith.constant 0 : index
    %c93 = arith.constant 93 : index
    %62 = vector.load %arg14[%c0_30, %c93] : memref<4x512xf32, #tpu.memory_space<vmem>>, vector<4x256xf32>
    %63 = vector.extract_strided_slice %36 {offsets = [0, 7], sizes = [4, 1], strides = [1, 1]} : vector<4x49xf32> to vector<4x1xf32>
    %64 = vector.broadcast %63 : vector<4x1xf32> to vector<4x256xf32>
    %65 = arith.mulf %62, %64 : vector<4x256xf32>
    %66 = arith.addf %61, %65 : vector<4x256xf32>
    %c0_31 = arith.constant 0 : index
    %c109 = arith.constant 109 : index
    %67 = vector.load %arg14[%c0_31, %c109] : memref<4x512xf32, #tpu.memory_space<vmem>>, vector<4x256xf32>
    %68 = vector.extract_strided_slice %36 {offsets = [0, 14], sizes = [4, 1], strides = [1, 1]} : vector<4x49xf32> to vector<4x1xf32>
    %69 = vector.broadcast %68 : vector<4x1xf32> to vector<4x256xf32>
    %70 = arith.mulf %67, %69 : vector<4x256xf32>
    %71 = arith.addf %66, %70 : vector<4x256xf32>
    %c0_32 = arith.constant 0 : index
    %c125 = arith.constant 125 : index
    %72 = vector.load %arg14[%c0_32, %c125] : memref<4x512xf32, #tpu.memory_space<vmem>>, vector<4x256xf32>
    %73 = vector.extract_strided_slice %36 {offsets = [0, 21], sizes = [4, 1], strides = [1, 1]} : vector<4x49xf32> to vector<4x1xf32>
    %74 = vector.broadcast %73 : vector<4x1xf32> to vector<4x256xf32>
    %75 = arith.mulf %72, %74 : vector<4x256xf32>
    %76 = arith.addf %71, %75 : vector<4x256xf32>
    %c0_33 = arith.constant 0 : index
    %c141 = arith.constant 141 : index
    %77 = vector.load %arg14[%c0_33, %c141] : memref<4x512xf32, #tpu.memory_space<vmem>>, vector<4x256xf32>
    %78 = vector.extract_strided_slice %36 {offsets = [0, 28], sizes = [4, 1], strides = [1, 1]} : vector<4x49xf32> to vector<4x1xf32>
    %79 = vector.broadcast %78 : vector<4x1xf32> to vector<4x256xf32>
    %80 = arith.mulf %77, %79 : vector<4x256xf32>
    %81 = arith.addf %76, %80 : vector<4x256xf32>
    %c0_34 = arith.constant 0 : index
    %c157 = arith.constant 157 : index
    %82 = vector.load %arg14[%c0_34, %c157] : memref<4x512xf32, #tpu.memory_space<vmem>>, vector<4x256xf32>
    %83 = vector.extract_strided_slice %36 {offsets = [0, 35], sizes = [4, 1], strides = [1, 1]} : vector<4x49xf32> to vector<4x1xf32>
    %84 = vector.broadcast %83 : vector<4x1xf32> to vector<4x256xf32>
    %85 = arith.mulf %82, %84 : vector<4x256xf32>
    %86 = arith.addf %81, %85 : vector<4x256xf32>
    %c0_35 = arith.constant 0 : index
    %c173 = arith.constant 173 : index
    %87 = vector.load %arg14[%c0_35, %c173] : memref<4x512xf32, #tpu.memory_space<vmem>>, vector<4x256xf32>
    %88 = vector.extract_strided_slice %36 {offsets = [0, 42], sizes = [4, 1], strides = [1, 1]} : vector<4x49xf32> to vector<4x1xf32>
    %89 = vector.broadcast %88 : vector<4x1xf32> to vector<4x256xf32>
    %90 = arith.mulf %87, %89 : vector<4x256xf32>
    %91 = arith.addf %86, %90 : vector<4x256xf32>
    %c-3_i32 = arith.constant -3 : i32
    %92 = vector.broadcast %c-3_i32 : i32 to vector<1x256xi32>
    %93 = arith.addi %53, %92 : vector<1x256xi32>
    %c0_i32_36 = arith.constant 0 : i32
    %94 = vector.broadcast %c0_i32_36 : i32 to vector<1x256xi32>
    %95 = arith.cmpi sge, %93, %94 : vector<1x256xi32>
    %c-3_i32_37 = arith.constant -3 : i32
    %96 = vector.broadcast %c-3_i32_37 : i32 to vector<1x256xi32>
    %97 = arith.addi %53, %96 : vector<1x256xi32>
    %c16_i32_38 = arith.constant 16 : i32
    %98 = vector.broadcast %c16_i32_38 : i32 to vector<1x256xi32>
    %99 = arith.cmpi slt, %97, %98 : vector<1x256xi32>
    %100 = arith.andi %95, %99 : vector<1x256xi1>
    %cst_39 = arith.constant 0.000000e+00 : f32
    %101 = vector.shape_cast %100 : vector<1x256xi1> to vector<1x256xi1>
    %102 = vector.broadcast %101 : vector<1x256xi1> to vector<4x256xi1>
    %103 = vector.broadcast %cst_39 : f32 to vector<4x256xf32>
    %104 = arith.select %102, %91, %103 : vector<4x256xi1>, vector<4x256xf32>
    %105 = arith.addf %54, %104 : vector<4x256xf32>
    %cst_40 = arith.constant 0.000000e+00 : f32
    %106 = vector.broadcast %cst_40 : f32 to vector<4x256xf32>
    %c0_41 = arith.constant 0 : index
    %c78 = arith.constant 78 : index
    %107 = vector.load %arg14[%c0_41, %c78] : memref<4x512xf32, #tpu.memory_space<vmem>>, vector<4x256xf32>
    %108 = vector.extract_strided_slice %36 {offsets = [0, 1], sizes = [4, 1], strides = [1, 1]} : vector<4x49xf32> to vector<4x1xf32>
    %109 = vector.broadcast %108 : vector<4x1xf32> to vector<4x256xf32>
    %110 = arith.mulf %107, %109 : vector<4x256xf32>
    %111 = arith.addf %106, %110 : vector<4x256xf32>
    %c0_42 = arith.constant 0 : index
    %c94 = arith.constant 94 : index
    %112 = vector.load %arg14[%c0_42, %c94] : memref<4x512xf32, #tpu.memory_space<vmem>>, vector<4x256xf32>
    %113 = vector.extract_strided_slice %36 {offsets = [0, 8], sizes = [4, 1], strides = [1, 1]} : vector<4x49xf32> to vector<4x1xf32>
    %114 = vector.broadcast %113 : vector<4x1xf32> to vector<4x256xf32>
    %115 = arith.mulf %112, %114 : vector<4x256xf32>
    %116 = arith.addf %111, %115 : vector<4x256xf32>
    %c0_43 = arith.constant 0 : index
    %c110 = arith.constant 110 : index
    %117 = vector.load %arg14[%c0_43, %c110] : memref<4x512xf32, #tpu.memory_space<vmem>>, vector<4x256xf32>
    %118 = vector.extract_strided_slice %36 {offsets = [0, 15], sizes = [4, 1], strides = [1, 1]} : vector<4x49xf32> to vector<4x1xf32>
    %119 = vector.broadcast %118 : vector<4x1xf32> to vector<4x256xf32>
    %120 = arith.mulf %117, %119 : vector<4x256xf32>
    %121 = arith.addf %116, %120 : vector<4x256xf32>
    %c0_44 = arith.constant 0 : index
    %c126 = arith.constant 126 : index
    %122 = vector.load %arg14[%c0_44, %c126] : memref<4x512xf32, #tpu.memory_space<vmem>>, vector<4x256xf32>
    %123 = vector.extract_strided_slice %36 {offsets = [0, 22], sizes = [4, 1], strides = [1, 1]} : vector<4x49xf32> to vector<4x1xf32>
    %124 = vector.broadcast %123 : vector<4x1xf32> to vector<4x256xf32>
    %125 = arith.mulf %122, %124 : vector<4x256xf32>
    %126 = arith.addf %121, %125 : vector<4x256xf32>
    %c0_45 = arith.constant 0 : index
    %c142 = arith.constant 142 : index
    %127 = vector.load %arg14[%c0_45, %c142] : memref<4x512xf32, #tpu.memory_space<vmem>>, vector<4x256xf32>
    %128 = vector.extract_strided_slice %36 {offsets = [0, 29], sizes = [4, 1], strides = [1, 1]} : vector<4x49xf32> to vector<4x1xf32>
    %129 = vector.broadcast %128 : vector<4x1xf32> to vector<4x256xf32>
    %130 = arith.mulf %127, %129 : vector<4x256xf32>
    %131 = arith.addf %126, %130 : vector<4x256xf32>
    %c0_46 = arith.constant 0 : index
    %c158 = arith.constant 158 : index
    %132 = vector.load %arg14[%c0_46, %c158] : memref<4x512xf32, #tpu.memory_space<vmem>>, vector<4x256xf32>
    %133 = vector.extract_strided_slice %36 {offsets = [0, 36], sizes = [4, 1], strides = [1, 1]} : vector<4x49xf32> to vector<4x1xf32>
    %134 = vector.broadcast %133 : vector<4x1xf32> to vector<4x256xf32>
    %135 = arith.mulf %132, %134 : vector<4x256xf32>
    %136 = arith.addf %131, %135 : vector<4x256xf32>
    %c0_47 = arith.constant 0 : index
    %c174 = arith.constant 174 : index
    %137 = vector.load %arg14[%c0_47, %c174] : memref<4x512xf32, #tpu.memory_space<vmem>>, vector<4x256xf32>
    %138 = vector.extract_strided_slice %36 {offsets = [0, 43], sizes = [4, 1], strides = [1, 1]} : vector<4x49xf32> to vector<4x1xf32>
    %139 = vector.broadcast %138 : vector<4x1xf32> to vector<4x256xf32>
    %140 = arith.mulf %137, %139 : vector<4x256xf32>
    %141 = arith.addf %136, %140 : vector<4x256xf32>
    %c-2_i32 = arith.constant -2 : i32
    %142 = vector.broadcast %c-2_i32 : i32 to vector<1x256xi32>
    %143 = arith.addi %53, %142 : vector<1x256xi32>
    %c0_i32_48 = arith.constant 0 : i32
    %144 = vector.broadcast %c0_i32_48 : i32 to vector<1x256xi32>
    %145 = arith.cmpi sge, %143, %144 : vector<1x256xi32>
    %c-2_i32_49 = arith.constant -2 : i32
    %146 = vector.broadcast %c-2_i32_49 : i32 to vector<1x256xi32>
    %147 = arith.addi %53, %146 : vector<1x256xi32>
    %c16_i32_50 = arith.constant 16 : i32
    %148 = vector.broadcast %c16_i32_50 : i32 to vector<1x256xi32>
    %149 = arith.cmpi slt, %147, %148 : vector<1x256xi32>
    %150 = arith.andi %145, %149 : vector<1x256xi1>
    %cst_51 = arith.constant 0.000000e+00 : f32
    %151 = vector.shape_cast %150 : vector<1x256xi1> to vector<1x256xi1>
    %152 = vector.broadcast %151 : vector<1x256xi1> to vector<4x256xi1>
    %153 = vector.broadcast %cst_51 : f32 to vector<4x256xf32>
    %154 = arith.select %152, %141, %153 : vector<4x256xi1>, vector<4x256xf32>
    %155 = arith.addf %55, %154 : vector<4x256xf32>
    %cst_52 = arith.constant 0.000000e+00 : f32
    %156 = vector.broadcast %cst_52 : f32 to vector<4x256xf32>
    %c0_53 = arith.constant 0 : index
    %c79 = arith.constant 79 : index
    %157 = vector.load %arg14[%c0_53, %c79] : memref<4x512xf32, #tpu.memory_space<vmem>>, vector<4x256xf32>
    %158 = vector.extract_strided_slice %36 {offsets = [0, 2], sizes = [4, 1], strides = [1, 1]} : vector<4x49xf32> to vector<4x1xf32>
    %159 = vector.broadcast %158 : vector<4x1xf32> to vector<4x256xf32>
    %160 = arith.mulf %157, %159 : vector<4x256xf32>
    %161 = arith.addf %156, %160 : vector<4x256xf32>
    %c0_54 = arith.constant 0 : index
    %c95 = arith.constant 95 : index
    %162 = vector.load %arg14[%c0_54, %c95] : memref<4x512xf32, #tpu.memory_space<vmem>>, vector<4x256xf32>
    %163 = vector.extract_strided_slice %36 {offsets = [0, 9], sizes = [4, 1], strides = [1, 1]} : vector<4x49xf32> to vector<4x1xf32>
    %164 = vector.broadcast %163 : vector<4x1xf32> to vector<4x256xf32>
    %165 = arith.mulf %162, %164 : vector<4x256xf32>
    %166 = arith.addf %161, %165 : vector<4x256xf32>
    %c0_55 = arith.constant 0 : index
    %c111 = arith.constant 111 : index
    %167 = vector.load %arg14[%c0_55, %c111] : memref<4x512xf32, #tpu.memory_space<vmem>>, vector<4x256xf32>
    %168 = vector.extract_strided_slice %36 {offsets = [0, 16], sizes = [4, 1], strides = [1, 1]} : vector<4x49xf32> to vector<4x1xf32>
    %169 = vector.broadcast %168 : vector<4x1xf32> to vector<4x256xf32>
    %170 = arith.mulf %167, %169 : vector<4x256xf32>
    %171 = arith.addf %166, %170 : vector<4x256xf32>
    %c0_56 = arith.constant 0 : index
    %c127 = arith.constant 127 : index
    %172 = vector.load %arg14[%c0_56, %c127] : memref<4x512xf32, #tpu.memory_space<vmem>>, vector<4x256xf32>
    %173 = vector.extract_strided_slice %36 {offsets = [0, 23], sizes = [4, 1], strides = [1, 1]} : vector<4x49xf32> to vector<4x1xf32>
    %174 = vector.broadcast %173 : vector<4x1xf32> to vector<4x256xf32>
    %175 = arith.mulf %172, %174 : vector<4x256xf32>
    %176 = arith.addf %171, %175 : vector<4x256xf32>
    %c0_57 = arith.constant 0 : index
    %c143 = arith.constant 143 : index
    %177 = vector.load %arg14[%c0_57, %c143] : memref<4x512xf32, #tpu.memory_space<vmem>>, vector<4x256xf32>
    %178 = vector.extract_strided_slice %36 {offsets = [0, 30], sizes = [4, 1], strides = [1, 1]} : vector<4x49xf32> to vector<4x1xf32>
    %179 = vector.broadcast %178 : vector<4x1xf32> to vector<4x256xf32>
    %180 = arith.mulf %177, %179 : vector<4x256xf32>
    %181 = arith.addf %176, %180 : vector<4x256xf32>
    %c0_58 = arith.constant 0 : index
    %c159 = arith.constant 159 : index
    %182 = vector.load %arg14[%c0_58, %c159] : memref<4x512xf32, #tpu.memory_space<vmem>>, vector<4x256xf32>
    %183 = vector.extract_strided_slice %36 {offsets = [0, 37], sizes = [4, 1], strides = [1, 1]} : vector<4x49xf32> to vector<4x1xf32>
    %184 = vector.broadcast %183 : vector<4x1xf32> to vector<4x256xf32>
    %185 = arith.mulf %182, %184 : vector<4x256xf32>
    %186 = arith.addf %181, %185 : vector<4x256xf32>
    %c0_59 = arith.constant 0 : index
    %c175 = arith.constant 175 : index
    %187 = vector.load %arg14[%c0_59, %c175] : memref<4x512xf32, #tpu.memory_space<vmem>>, vector<4x256xf32>
    %188 = vector.extract_strided_slice %36 {offsets = [0, 44], sizes = [4, 1], strides = [1, 1]} : vector<4x49xf32> to vector<4x1xf32>
    %189 = vector.broadcast %188 : vector<4x1xf32> to vector<4x256xf32>
    %190 = arith.mulf %187, %189 : vector<4x256xf32>
    %191 = arith.addf %186, %190 : vector<4x256xf32>
    %c-1_i32 = arith.constant -1 : i32
    %192 = vector.broadcast %c-1_i32 : i32 to vector<1x256xi32>
    %193 = arith.addi %53, %192 : vector<1x256xi32>
    %c0_i32_60 = arith.constant 0 : i32
    %194 = vector.broadcast %c0_i32_60 : i32 to vector<1x256xi32>
    %195 = arith.cmpi sge, %193, %194 : vector<1x256xi32>
    %c-1_i32_61 = arith.constant -1 : i32
    %196 = vector.broadcast %c-1_i32_61 : i32 to vector<1x256xi32>
    %197 = arith.addi %53, %196 : vector<1x256xi32>
    %c16_i32_62 = arith.constant 16 : i32
    %198 = vector.broadcast %c16_i32_62 : i32 to vector<1x256xi32>
    %199 = arith.cmpi slt, %197, %198 : vector<1x256xi32>
    %200 = arith.andi %195, %199 : vector<1x256xi1>
    %cst_63 = arith.constant 0.000000e+00 : f32
    %201 = vector.shape_cast %200 : vector<1x256xi1> to vector<1x256xi1>
    %202 = vector.broadcast %201 : vector<1x256xi1> to vector<4x256xi1>
    %203 = vector.broadcast %cst_63 : f32 to vector<4x256xf32>
    %204 = arith.select %202, %191, %203 : vector<4x256xi1>, vector<4x256xf32>
    %205 = arith.addf %105, %204 : vector<4x256xf32>
    %cst_64 = arith.constant 0.000000e+00 : f32
    %206 = vector.broadcast %cst_64 : f32 to vector<4x256xf32>
    %c0_65 = arith.constant 0 : index
    %c80 = arith.constant 80 : index
    %207 = vector.load %arg14[%c0_65, %c80] : memref<4x512xf32, #tpu.memory_space<vmem>>, vector<4x256xf32>
    %208 = vector.extract_strided_slice %36 {offsets = [0, 3], sizes = [4, 1], strides = [1, 1]} : vector<4x49xf32> to vector<4x1xf32>
    %209 = vector.broadcast %208 : vector<4x1xf32> to vector<4x256xf32>
    %210 = arith.mulf %207, %209 : vector<4x256xf32>
    %211 = arith.addf %206, %210 : vector<4x256xf32>
    %c0_66 = arith.constant 0 : index
    %c96 = arith.constant 96 : index
    %212 = vector.load %arg14[%c0_66, %c96] : memref<4x512xf32, #tpu.memory_space<vmem>>, vector<4x256xf32>
    %213 = vector.extract_strided_slice %36 {offsets = [0, 10], sizes = [4, 1], strides = [1, 1]} : vector<4x49xf32> to vector<4x1xf32>
    %214 = vector.broadcast %213 : vector<4x1xf32> to vector<4x256xf32>
    %215 = arith.mulf %212, %214 : vector<4x256xf32>
    %216 = arith.addf %211, %215 : vector<4x256xf32>
    %c0_67 = arith.constant 0 : index
    %c112 = arith.constant 112 : index
    %217 = vector.load %arg14[%c0_67, %c112] : memref<4x512xf32, #tpu.memory_space<vmem>>, vector<4x256xf32>
    %218 = vector.extract_strided_slice %36 {offsets = [0, 17], sizes = [4, 1], strides = [1, 1]} : vector<4x49xf32> to vector<4x1xf32>
    %219 = vector.broadcast %218 : vector<4x1xf32> to vector<4x256xf32>
    %220 = arith.mulf %217, %219 : vector<4x256xf32>
    %221 = arith.addf %216, %220 : vector<4x256xf32>
    %c0_68 = arith.constant 0 : index
    %c128_69 = arith.constant 128 : index
    %222 = vector.load %arg14[%c0_68, %c128_69] : memref<4x512xf32, #tpu.memory_space<vmem>>, vector<4x256xf32>
    %223 = vector.extract_strided_slice %36 {offsets = [0, 24], sizes = [4, 1], strides = [1, 1]} : vector<4x49xf32> to vector<4x1xf32>
    %224 = vector.broadcast %223 : vector<4x1xf32> to vector<4x256xf32>
    %225 = arith.mulf %222, %224 : vector<4x256xf32>
    %226 = arith.addf %221, %225 : vector<4x256xf32>
    %c0_70 = arith.constant 0 : index
    %c144 = arith.constant 144 : index
    %227 = vector.load %arg14[%c0_70, %c144] : memref<4x512xf32, #tpu.memory_space<vmem>>, vector<4x256xf32>
    %228 = vector.extract_strided_slice %36 {offsets = [0, 31], sizes = [4, 1], strides = [1, 1]} : vector<4x49xf32> to vector<4x1xf32>
    %229 = vector.broadcast %228 : vector<4x1xf32> to vector<4x256xf32>
    %230 = arith.mulf %227, %229 : vector<4x256xf32>
    %231 = arith.addf %226, %230 : vector<4x256xf32>
    %c0_71 = arith.constant 0 : index
    %c160 = arith.constant 160 : index
    %232 = vector.load %arg14[%c0_71, %c160] : memref<4x512xf32, #tpu.memory_space<vmem>>, vector<4x256xf32>
    %233 = vector.extract_strided_slice %36 {offsets = [0, 38], sizes = [4, 1], strides = [1, 1]} : vector<4x49xf32> to vector<4x1xf32>
    %234 = vector.broadcast %233 : vector<4x1xf32> to vector<4x256xf32>
    %235 = arith.mulf %232, %234 : vector<4x256xf32>
    %236 = arith.addf %231, %235 : vector<4x256xf32>
    %c0_72 = arith.constant 0 : index
    %c176 = arith.constant 176 : index
    %237 = vector.load %arg14[%c0_72, %c176] : memref<4x512xf32, #tpu.memory_space<vmem>>, vector<4x256xf32>
    %238 = vector.extract_strided_slice %36 {offsets = [0, 45], sizes = [4, 1], strides = [1, 1]} : vector<4x49xf32> to vector<4x1xf32>
    %239 = vector.broadcast %238 : vector<4x1xf32> to vector<4x256xf32>
    %240 = arith.mulf %237, %239 : vector<4x256xf32>
    %241 = arith.addf %236, %240 : vector<4x256xf32>
    %242 = arith.addf %205, %241 : vector<4x256xf32>
    %cst_73 = arith.constant 0.000000e+00 : f32
    %243 = vector.broadcast %cst_73 : f32 to vector<4x256xf32>
    %c0_74 = arith.constant 0 : index
    %c81 = arith.constant 81 : index
    %244 = vector.load %arg14[%c0_74, %c81] : memref<4x512xf32, #tpu.memory_space<vmem>>, vector<4x256xf32>
    %245 = vector.extract_strided_slice %36 {offsets = [0, 4], sizes = [4, 1], strides = [1, 1]} : vector<4x49xf32> to vector<4x1xf32>
    %246 = vector.broadcast %245 : vector<4x1xf32> to vector<4x256xf32>
    %247 = arith.mulf %244, %246 : vector<4x256xf32>
    %248 = arith.addf %243, %247 : vector<4x256xf32>
    %c0_75 = arith.constant 0 : index
    %c97 = arith.constant 97 : index
    %249 = vector.load %arg14[%c0_75, %c97] : memref<4x512xf32, #tpu.memory_space<vmem>>, vector<4x256xf32>
    %250 = vector.extract_strided_slice %36 {offsets = [0, 11], sizes = [4, 1], strides = [1, 1]} : vector<4x49xf32> to vector<4x1xf32>
    %251 = vector.broadcast %250 : vector<4x1xf32> to vector<4x256xf32>
    %252 = arith.mulf %249, %251 : vector<4x256xf32>
    %253 = arith.addf %248, %252 : vector<4x256xf32>
    %c0_76 = arith.constant 0 : index
    %c113 = arith.constant 113 : index
    %254 = vector.load %arg14[%c0_76, %c113] : memref<4x512xf32, #tpu.memory_space<vmem>>, vector<4x256xf32>
    %255 = vector.extract_strided_slice %36 {offsets = [0, 18], sizes = [4, 1], strides = [1, 1]} : vector<4x49xf32> to vector<4x1xf32>
    %256 = vector.broadcast %255 : vector<4x1xf32> to vector<4x256xf32>
    %257 = arith.mulf %254, %256 : vector<4x256xf32>
    %258 = arith.addf %253, %257 : vector<4x256xf32>
    %c0_77 = arith.constant 0 : index
    %c129 = arith.constant 129 : index
    %259 = vector.load %arg14[%c0_77, %c129] : memref<4x512xf32, #tpu.memory_space<vmem>>, vector<4x256xf32>
    %260 = vector.extract_strided_slice %36 {offsets = [0, 25], sizes = [4, 1], strides = [1, 1]} : vector<4x49xf32> to vector<4x1xf32>
    %261 = vector.broadcast %260 : vector<4x1xf32> to vector<4x256xf32>
    %262 = arith.mulf %259, %261 : vector<4x256xf32>
    %263 = arith.addf %258, %262 : vector<4x256xf32>
    %c0_78 = arith.constant 0 : index
    %c145 = arith.constant 145 : index
    %264 = vector.load %arg14[%c0_78, %c145] : memref<4x512xf32, #tpu.memory_space<vmem>>, vector<4x256xf32>
    %265 = vector.extract_strided_slice %36 {offsets = [0, 32], sizes = [4, 1], strides = [1, 1]} : vector<4x49xf32> to vector<4x1xf32>
    %266 = vector.broadcast %265 : vector<4x1xf32> to vector<4x256xf32>
    %267 = arith.mulf %264, %266 : vector<4x256xf32>
    %268 = arith.addf %263, %267 : vector<4x256xf32>
    %c0_79 = arith.constant 0 : index
    %c161 = arith.constant 161 : index
    %269 = vector.load %arg14[%c0_79, %c161] : memref<4x512xf32, #tpu.memory_space<vmem>>, vector<4x256xf32>
    %270 = vector.extract_strided_slice %36 {offsets = [0, 39], sizes = [4, 1], strides = [1, 1]} : vector<4x49xf32> to vector<4x1xf32>
    %271 = vector.broadcast %270 : vector<4x1xf32> to vector<4x256xf32>
    %272 = arith.mulf %269, %271 : vector<4x256xf32>
    %273 = arith.addf %268, %272 : vector<4x256xf32>
    %c0_80 = arith.constant 0 : index
    %c177 = arith.constant 177 : index
    %274 = vector.load %arg14[%c0_80, %c177] : memref<4x512xf32, #tpu.memory_space<vmem>>, vector<4x256xf32>
    %275 = vector.extract_strided_slice %36 {offsets = [0, 46], sizes = [4, 1], strides = [1, 1]} : vector<4x49xf32> to vector<4x1xf32>
    %276 = vector.broadcast %275 : vector<4x1xf32> to vector<4x256xf32>
    %277 = arith.mulf %274, %276 : vector<4x256xf32>
    %278 = arith.addf %273, %277 : vector<4x256xf32>
    %c1_i32_81 = arith.constant 1 : i32
    %279 = vector.broadcast %c1_i32_81 : i32 to vector<1x256xi32>
    %280 = arith.addi %53, %279 : vector<1x256xi32>
    %c0_i32_82 = arith.constant 0 : i32
    %281 = vector.broadcast %c0_i32_82 : i32 to vector<1x256xi32>
    %282 = arith.cmpi sge, %280, %281 : vector<1x256xi32>
    %c1_i32_83 = arith.constant 1 : i32
    %283 = vector.broadcast %c1_i32_83 : i32 to vector<1x256xi32>
    %284 = arith.addi %53, %283 : vector<1x256xi32>
    %c16_i32_84 = arith.constant 16 : i32
    %285 = vector.broadcast %c16_i32_84 : i32 to vector<1x256xi32>
    %286 = arith.cmpi slt, %284, %285 : vector<1x256xi32>
    %287 = arith.andi %282, %286 : vector<1x256xi1>
    %cst_85 = arith.constant 0.000000e+00 : f32
    %288 = vector.shape_cast %287 : vector<1x256xi1> to vector<1x256xi1>
    %289 = vector.broadcast %288 : vector<1x256xi1> to vector<4x256xi1>
    %290 = vector.broadcast %cst_85 : f32 to vector<4x256xf32>
    %291 = arith.select %289, %278, %290 : vector<4x256xi1>, vector<4x256xf32>
    %292 = arith.addf %242, %291 : vector<4x256xf32>
    %cst_86 = arith.constant 0.000000e+00 : f32
    %293 = vector.broadcast %cst_86 : f32 to vector<4x256xf32>
    %c0_87 = arith.constant 0 : index
    %c82 = arith.constant 82 : index
    %294 = vector.load %arg14[%c0_87, %c82] : memref<4x512xf32, #tpu.memory_space<vmem>>, vector<4x256xf32>
    %295 = vector.extract_strided_slice %36 {offsets = [0, 5], sizes = [4, 1], strides = [1, 1]} : vector<4x49xf32> to vector<4x1xf32>
    %296 = vector.broadcast %295 : vector<4x1xf32> to vector<4x256xf32>
    %297 = arith.mulf %294, %296 : vector<4x256xf32>
    %298 = arith.addf %293, %297 : vector<4x256xf32>
    %c0_88 = arith.constant 0 : index
    %c98 = arith.constant 98 : index
    %299 = vector.load %arg14[%c0_88, %c98] : memref<4x512xf32, #tpu.memory_space<vmem>>, vector<4x256xf32>
    %300 = vector.extract_strided_slice %36 {offsets = [0, 12], sizes = [4, 1], strides = [1, 1]} : vector<4x49xf32> to vector<4x1xf32>
    %301 = vector.broadcast %300 : vector<4x1xf32> to vector<4x256xf32>
    %302 = arith.mulf %299, %301 : vector<4x256xf32>
    %303 = arith.addf %298, %302 : vector<4x256xf32>
    %c0_89 = arith.constant 0 : index
    %c114 = arith.constant 114 : index
    %304 = vector.load %arg14[%c0_89, %c114] : memref<4x512xf32, #tpu.memory_space<vmem>>, vector<4x256xf32>
    %305 = vector.extract_strided_slice %36 {offsets = [0, 19], sizes = [4, 1], strides = [1, 1]} : vector<4x49xf32> to vector<4x1xf32>
    %306 = vector.broadcast %305 : vector<4x1xf32> to vector<4x256xf32>
    %307 = arith.mulf %304, %306 : vector<4x256xf32>
    %308 = arith.addf %303, %307 : vector<4x256xf32>
    %c0_90 = arith.constant 0 : index
    %c130 = arith.constant 130 : index
    %309 = vector.load %arg14[%c0_90, %c130] : memref<4x512xf32, #tpu.memory_space<vmem>>, vector<4x256xf32>
    %310 = vector.extract_strided_slice %36 {offsets = [0, 26], sizes = [4, 1], strides = [1, 1]} : vector<4x49xf32> to vector<4x1xf32>
    %311 = vector.broadcast %310 : vector<4x1xf32> to vector<4x256xf32>
    %312 = arith.mulf %309, %311 : vector<4x256xf32>
    %313 = arith.addf %308, %312 : vector<4x256xf32>
    %c0_91 = arith.constant 0 : index
    %c146 = arith.constant 146 : index
    %314 = vector.load %arg14[%c0_91, %c146] : memref<4x512xf32, #tpu.memory_space<vmem>>, vector<4x256xf32>
    %315 = vector.extract_strided_slice %36 {offsets = [0, 33], sizes = [4, 1], strides = [1, 1]} : vector<4x49xf32> to vector<4x1xf32>
    %316 = vector.broadcast %315 : vector<4x1xf32> to vector<4x256xf32>
    %317 = arith.mulf %314, %316 : vector<4x256xf32>
    %318 = arith.addf %313, %317 : vector<4x256xf32>
    %c0_92 = arith.constant 0 : index
    %c162 = arith.constant 162 : index
    %319 = vector.load %arg14[%c0_92, %c162] : memref<4x512xf32, #tpu.memory_space<vmem>>, vector<4x256xf32>
    %320 = vector.extract_strided_slice %36 {offsets = [0, 40], sizes = [4, 1], strides = [1, 1]} : vector<4x49xf32> to vector<4x1xf32>
    %321 = vector.broadcast %320 : vector<4x1xf32> to vector<4x256xf32>
    %322 = arith.mulf %319, %321 : vector<4x256xf32>
    %323 = arith.addf %318, %322 : vector<4x256xf32>
    %c0_93 = arith.constant 0 : index
    %c178 = arith.constant 178 : index
    %324 = vector.load %arg14[%c0_93, %c178] : memref<4x512xf32, #tpu.memory_space<vmem>>, vector<4x256xf32>
    %325 = vector.extract_strided_slice %36 {offsets = [0, 47], sizes = [4, 1], strides = [1, 1]} : vector<4x49xf32> to vector<4x1xf32>
    %326 = vector.broadcast %325 : vector<4x1xf32> to vector<4x256xf32>
    %327 = arith.mulf %324, %326 : vector<4x256xf32>
    %328 = arith.addf %323, %327 : vector<4x256xf32>
    %c2_i32 = arith.constant 2 : i32
    %329 = vector.broadcast %c2_i32 : i32 to vector<1x256xi32>
    %330 = arith.addi %53, %329 : vector<1x256xi32>
    %c0_i32_94 = arith.constant 0 : i32
    %331 = vector.broadcast %c0_i32_94 : i32 to vector<1x256xi32>
    %332 = arith.cmpi sge, %330, %331 : vector<1x256xi32>
    %c2_i32_95 = arith.constant 2 : i32
    %333 = vector.broadcast %c2_i32_95 : i32 to vector<1x256xi32>
    %334 = arith.addi %53, %333 : vector<1x256xi32>
    %c16_i32_96 = arith.constant 16 : i32
    %335 = vector.broadcast %c16_i32_96 : i32 to vector<1x256xi32>
    %336 = arith.cmpi slt, %334, %335 : vector<1x256xi32>
    %337 = arith.andi %332, %336 : vector<1x256xi1>
    %cst_97 = arith.constant 0.000000e+00 : f32
    %338 = vector.shape_cast %337 : vector<1x256xi1> to vector<1x256xi1>
    %339 = vector.broadcast %338 : vector<1x256xi1> to vector<4x256xi1>
    %340 = vector.broadcast %cst_97 : f32 to vector<4x256xf32>
    %341 = arith.select %339, %328, %340 : vector<4x256xi1>, vector<4x256xf32>
    %342 = arith.addf %155, %341 : vector<4x256xf32>
    %cst_98 = arith.constant 0.000000e+00 : f32
    %343 = vector.broadcast %cst_98 : f32 to vector<4x256xf32>
    %c0_99 = arith.constant 0 : index
    %c83 = arith.constant 83 : index
    %344 = vector.load %arg14[%c0_99, %c83] : memref<4x512xf32, #tpu.memory_space<vmem>>, vector<4x256xf32>
    %345 = vector.extract_strided_slice %36 {offsets = [0, 6], sizes = [4, 1], strides = [1, 1]} : vector<4x49xf32> to vector<4x1xf32>
    %346 = vector.broadcast %345 : vector<4x1xf32> to vector<4x256xf32>
    %347 = arith.mulf %344, %346 : vector<4x256xf32>
    %348 = arith.addf %343, %347 : vector<4x256xf32>
    %c0_100 = arith.constant 0 : index
    %c99 = arith.constant 99 : index
    %349 = vector.load %arg14[%c0_100, %c99] : memref<4x512xf32, #tpu.memory_space<vmem>>, vector<4x256xf32>
    %350 = vector.extract_strided_slice %36 {offsets = [0, 13], sizes = [4, 1], strides = [1, 1]} : vector<4x49xf32> to vector<4x1xf32>
    %351 = vector.broadcast %350 : vector<4x1xf32> to vector<4x256xf32>
    %352 = arith.mulf %349, %351 : vector<4x256xf32>
    %353 = arith.addf %348, %352 : vector<4x256xf32>
    %c0_101 = arith.constant 0 : index
    %c115 = arith.constant 115 : index
    %354 = vector.load %arg14[%c0_101, %c115] : memref<4x512xf32, #tpu.memory_space<vmem>>, vector<4x256xf32>
    %355 = vector.extract_strided_slice %36 {offsets = [0, 20], sizes = [4, 1], strides = [1, 1]} : vector<4x49xf32> to vector<4x1xf32>
    %356 = vector.broadcast %355 : vector<4x1xf32> to vector<4x256xf32>
    %357 = arith.mulf %354, %356 : vector<4x256xf32>
    %358 = arith.addf %353, %357 : vector<4x256xf32>
    %c0_102 = arith.constant 0 : index
    %c131 = arith.constant 131 : index
    %359 = vector.load %arg14[%c0_102, %c131] : memref<4x512xf32, #tpu.memory_space<vmem>>, vector<4x256xf32>
    %360 = vector.extract_strided_slice %36 {offsets = [0, 27], sizes = [4, 1], strides = [1, 1]} : vector<4x49xf32> to vector<4x1xf32>
    %361 = vector.broadcast %360 : vector<4x1xf32> to vector<4x256xf32>
    %362 = arith.mulf %359, %361 : vector<4x256xf32>
    %363 = arith.addf %358, %362 : vector<4x256xf32>
    %c0_103 = arith.constant 0 : index
    %c147 = arith.constant 147 : index
    %364 = vector.load %arg14[%c0_103, %c147] : memref<4x512xf32, #tpu.memory_space<vmem>>, vector<4x256xf32>
    %365 = vector.extract_strided_slice %36 {offsets = [0, 34], sizes = [4, 1], strides = [1, 1]} : vector<4x49xf32> to vector<4x1xf32>
    %366 = vector.broadcast %365 : vector<4x1xf32> to vector<4x256xf32>
    %367 = arith.mulf %364, %366 : vector<4x256xf32>
    %368 = arith.addf %363, %367 : vector<4x256xf32>
    %c0_104 = arith.constant 0 : index
    %c163 = arith.constant 163 : index
    %369 = vector.load %arg14[%c0_104, %c163] : memref<4x512xf32, #tpu.memory_space<vmem>>, vector<4x256xf32>
    %370 = vector.extract_strided_slice %36 {offsets = [0, 41], sizes = [4, 1], strides = [1, 1]} : vector<4x49xf32> to vector<4x1xf32>
    %371 = vector.broadcast %370 : vector<4x1xf32> to vector<4x256xf32>
    %372 = arith.mulf %369, %371 : vector<4x256xf32>
    %373 = arith.addf %368, %372 : vector<4x256xf32>
    %c0_105 = arith.constant 0 : index
    %c179 = arith.constant 179 : index
    %374 = vector.load %arg14[%c0_105, %c179] : memref<4x512xf32, #tpu.memory_space<vmem>>, vector<4x256xf32>
    %375 = vector.extract_strided_slice %36 {offsets = [0, 48], sizes = [4, 1], strides = [1, 1]} : vector<4x49xf32> to vector<4x1xf32>
    %376 = vector.broadcast %375 : vector<4x1xf32> to vector<4x256xf32>
    %377 = arith.mulf %374, %376 : vector<4x256xf32>
    %378 = arith.addf %373, %377 : vector<4x256xf32>
    %c3_i32 = arith.constant 3 : i32
    %379 = vector.broadcast %c3_i32 : i32 to vector<1x256xi32>
    %380 = arith.addi %53, %379 : vector<1x256xi32>
    %c0_i32_106 = arith.constant 0 : i32
    %381 = vector.broadcast %c0_i32_106 : i32 to vector<1x256xi32>
    %382 = arith.cmpi sge, %380, %381 : vector<1x256xi32>
    %c3_i32_107 = arith.constant 3 : i32
    %383 = vector.broadcast %c3_i32_107 : i32 to vector<1x256xi32>
    %384 = arith.addi %53, %383 : vector<1x256xi32>
    %c16_i32_108 = arith.constant 16 : i32
    %385 = vector.broadcast %c16_i32_108 : i32 to vector<1x256xi32>
    %386 = arith.cmpi slt, %384, %385 : vector<1x256xi32>
    %387 = arith.andi %382, %386 : vector<1x256xi1>
    %cst_109 = arith.constant 0.000000e+00 : f32
    %388 = vector.shape_cast %387 : vector<1x256xi1> to vector<1x256xi1>
    %389 = vector.broadcast %388 : vector<1x256xi1> to vector<4x256xi1>
    %390 = vector.broadcast %cst_109 : f32 to vector<4x256xf32>
    %391 = arith.select %389, %378, %390 : vector<4x256xi1>, vector<4x256xf32>
    %392 = arith.addf %292, %391 : vector<4x256xf32>
    %393 = arith.addf %392, %342 : vector<4x256xf32>
    %c0_110 = arith.constant 0 : index
    %c0_111 = arith.constant 0 : index
    %394 = vector.load %arg7[%c0_110, %c0_111] : memref<4x1xf32, #tpu.memory_space<vmem>>, vector<4x1xf32>
    %395 = vector.broadcast %394 : vector<4x1xf32> to vector<4x256xf32>
    %396 = arith.addf %393, %395 : vector<4x256xf32>
    %397 = arith.mulf %29, %396 : vector<4x256xf32>
    %cst_112 = arith.constant dense<0.000000e+00> : vector<4xf32>
    %398 = vector.multi_reduction <add>, %397, %cst_112 [1] : vector<4x256xf32> to vector<4xf32>
    %399 = vector.shape_cast %398 : vector<4xf32> to vector<4x1xf32>
    %cst_113 = arith.constant 2.560000e+02 : f32
    %400 = vector.broadcast %cst_113 : f32 to vector<4x1xf32>
    %401 = arith.divf %399, %400 : vector<4x1xf32>
    %c0_114 = arith.constant 0 : index
    %c0_115 = arith.constant 0 : index
    %402 = vector.load %arg8[%c0_114, %c0_115] : memref<4x4xf32, #tpu.memory_space<vmem>>, vector<4x4xf32>
    %cst_116 = arith.constant dense<0.000000e+00> : vector<4x1xf32>
    %403 = tpu.matmul %402, %401, %cst_116 {dimension_numbers = #tpu.dot_dimension_numbers<[1], [0], [0], [1], [0, 0, 1, 1], [], []>} : vector<4x4xf32>, vector<4x1xf32>, vector<4x1xf32> -> vector<4x1xf32>
    %c0_117 = arith.constant 0 : index
    %c0_118 = arith.constant 0 : index
    %404 = vector.load %arg9[%c0_117, %c0_118] : memref<4x1xf32, #tpu.memory_space<vmem>>, vector<4x1xf32>
    %405 = arith.addf %403, %404 : vector<4x1xf32>
    %406 = vector.broadcast %405 : vector<4x1xf32> to vector<4x256xf32>
    %407 = arith.mulf %397, %406 : vector<4x256xf32>
    %c0_119 = arith.constant 0 : index
    %c0_120 = arith.constant 0 : index
    %408 = vector.load %arg10[%c0_119, %c0_120] : memref<4x4xf32, #tpu.memory_space<vmem>>, vector<4x4xf32>
    %cst_121 = arith.constant dense<0.000000e+00> : vector<4x256xf32>
    %409 = tpu.matmul %408, %407, %cst_121 {dimension_numbers = #tpu.dot_dimension_numbers<[1], [0], [0], [1], [0, 0, 1, 1], [], []>} : vector<4x4xf32>, vector<4x256xf32>, vector<4x256xf32> -> vector<4x256xf32>
    %c0_122 = arith.constant 0 : index
    %c0_123 = arith.constant 0 : index
    %410 = vector.load %arg11[%c0_122, %c0_123] : memref<4x1xf32, #tpu.memory_space<vmem>>, vector<4x1xf32>
    %411 = vector.broadcast %410 : vector<4x1xf32> to vector<4x256xf32>
    %412 = arith.addf %409, %411 : vector<4x256xf32>
    %c0_124 = arith.constant 0 : index
    %c0_125 = arith.constant 0 : index
    %413 = vector.load %arg12[%c0_124, %c0_125] : memref<4x1xf32, #tpu.memory_space<vmem>>, vector<4x1xf32>
    %414 = vector.broadcast %413 : vector<4x1xf32> to vector<4x256xf32>
    %415 = arith.mulf %412, %414 : vector<4x256xf32>
    %416 = arith.addf %1, %415 : vector<4x256xf32>
    %c0_126 = arith.constant 0 : index
    %c0_127 = arith.constant 0 : index
    %c0_128 = arith.constant 0 : index
    %417 = vector.load %arg13[%c0_126, %c0_127, %c0_128] : memref<1x4x256xf32, #tpu.memory_space<vmem>>, vector<1x4x256xf32>
    %418 = vector.shape_cast %417 : vector<1x4x256xf32> to vector<4x256xf32>
    %419 = vector.shape_cast %416 : vector<4x256xf32> to vector<1x4x256xf32>
    tpu.vector_store %arg13[%c0_126, %c0_127, %c0_128], %419 {strides = array<i32>} : memref<1x4x256xf32, #tpu.memory_space<vmem>>, vector<1x4x256xf32>,
    return
  }
  func.func @transform_0(%arg0: i32) -> (i32, i32, i32) {
    %c0_i32 = arith.constant 0 : i32
    %c0_i32_0 = arith.constant 0 : i32
    %c0_i32_1 = arith.constant 0 : i32
    return %arg0, %c0_i32, %c0_i32_0 : i32, i32, i32
  }
  func.func @transform_1(%arg0: i32) -> (i32, i32) {
    %c0_i32 = arith.constant 0 : i32
    %c0_i32_0 = arith.constant 0 : i32
    %c0_i32_1 = arith.constant 0 : i32
    return %c0_i32, %c0_i32_0 : i32, i32
  }
  func.func @transform_2(%arg0: i32) -> (i32, i32) {
    %c0_i32 = arith.constant 0 : i32
    %c0_i32_0 = arith.constant 0 : i32
    %c0_i32_1 = arith.constant 0 : i32
    return %c0_i32, %c0_i32_0 : i32, i32
  }
  func.func @transform_3(%arg0: i32) -> (i32, i32) {
    %c0_i32 = arith.constant 0 : i32
    %c0_i32_0 = arith.constant 0 : i32
    %c0_i32_1 = arith.constant 0 : i32
    return %c0_i32, %c0_i32_0 : i32, i32
  }
  func.func @transform_4(%arg0: i32) -> (i32, i32) {
    %c0_i32 = arith.constant 0 : i32
    %c0_i32_0 = arith.constant 0 : i32
    %c0_i32_1 = arith.constant 0 : i32
    return %c0_i32, %c0_i32_0 : i32, i32
  }
  func.func @transform_5(%arg0: i32) -> (i32, i32) {
    %c0_i32 = arith.constant 0 : i32
    %c0_i32_0 = arith.constant 0 : i32
    %c0_i32_1 = arith.constant 0 : i32
    return %c0_i32, %c0_i32_0 : i32, i32
  }
  func.func @transform_6(%arg0: i32) -> (i32, i32) {
    %c0_i32 = arith.constant 0 : i32
    %c0_i32_0 = arith.constant 0 : i32
    %c0_i32_1 = arith.constant 0 : i32
    return %c0_i32, %c0_i32_0 : i32, i32
  }
  func.func @transform_7(%arg0: i32) -> (i32, i32) {
    %c0_i32 = arith.constant 0 : i32
    %c0_i32_0 = arith.constant 0 : i32
    %c0_i32_1 = arith.constant 0 : i32
    return %c0_i32, %c0_i32_0 : i32, i32
  }
  func.func @transform_8(%arg0: i32) -> (i32, i32) {
    %c0_i32 = arith.constant 0 : i32
    %c0_i32_0 = arith.constant 0 : i32
    %c0_i32_1 = arith.constant 0 : i32
    return %c0_i32, %c0_i32_0 : i32, i32
  }
  func.func @transform_9(%arg0: i32) -> (i32, i32) {
    %c0_i32 = arith.constant 0 : i32
    %c0_i32_0 = arith.constant 0 : i32
    %c0_i32_1 = arith.constant 0 : i32
    return %c0_i32, %c0_i32_0 : i32, i32
  }
  func.func @transform_10(%arg0: i32) -> (i32, i32) {
    %c0_i32 = arith.constant 0 : i32
    %c0_i32_0 = arith.constant 0 : i32
    %c0_i32_1 = arith.constant 0 : i32
    return %c0_i32, %c0_i32_0 : i32, i32
  }
  func.func @transform_11(%arg0: i32) -> (i32, i32) {
    %c0_i32 = arith.constant 0 : i32
    %c0_i32_0 = arith.constant 0 : i32
    %c0_i32_1 = arith.constant 0 : i32
    return %c0_i32, %c0_i32_0 : i32, i32
  }
  func.func @transform_12(%arg0: i32) -> (i32, i32, i32) {
    %c0_i32 = arith.constant 0 : i32
    %c0_i32_0 = arith.constant 0 : i32
    %c0_i32_1 = arith.constant 0 : i32
    return %arg0, %c0_i32, %c0_i32_0 : i32, i32, i32
  }
}

</mosaic_0001>

<bundles_post_ra>
// kernel: tpu_custom_call.1
= control target key start
LH: loop header
LB: loop body
LE: loop exit
PB: predicated region body
PF: predicated region fallthrough
CT: control target
= control target key end

     0   :  { %s3791_s0 = inlined_call_operand.vmem [shape: f32[2,4,256], index: 0, kind: input, shape index: {}]   ;;  %s3792_s1 = inlined_call_operand.vmem [shape: f32[4,1], index: 1, kind: input, shape index: {}]   ;;  %s3793_s2 = inlined_call_operand.vmem [shape: f32[4,1], index: 2, kind: input, shape index: {}]   ;;  %s3794_s3 = inlined_call_operand.vmem [shape: f32[8,4], index: 3, kind: input, shape index: {}]   ;;  %s3795_s4 = inlined_call_operand.vmem [shape: f32[8,1], index: 4, kind: input, shape index: {}]   ;;  %s3796_s5 = inlined_call_operand.vmem [shape: f32[4,49], index: 5, kind: input, shape index: {}]   ;;  %s3797_s6 = inlined_call_operand.vmem [shape: f32[4,1], index: 6, kind: input, shape index: {}]   ;;  %s3798_s7 = inlined_call_operand.vmem [shape: f32[4,4], index: 7, kind: input, shape index: {}]   ;;  %s3799_s8 = inlined_call_operand.vmem [shape: f32[4,1], index: 8, kind: input, shape index: {}]   ;;  %s3800_s9 = inlined_call_operand.vmem [shape: f32[4,4], index: 9, kind: input, shape index: {}]   ;;  %s3801_s10 = inlined_call_operand.vmem [shape: f32[4,1], index: 10, kind: input, shape index: {}]   ;;  %s3802_s11 = inlined_call_operand.vmem [shape: f32[4,1], index: 11, kind: input, shape index: {}]   ;;  %s3803_s12 = inlined_call_operand.hbm [shape: f32[2,4,256], index: 12, kind: output, shape index: {}]  }
   0x1   :  { %3816 = sst [smem:[#allocation9_spill]] %s3791_s0 }
   0x2   :  { %3817 = sst [smem:[#allocation10_spill]] %s3792_s1 }
   0x3   :  { %17 = vsyncpa [#allocation4], 0 }
   0x4   :  { %19 = vsyncpa [#allocation4 + $0x1], 0  ;;  %s2723_s21 = smov 0   ;;  %s2725_s22 = smov 0  }
   0x5   :  { %s2727_s23 = smov 0   ;;  %s2729_s24 = smov 0  }
   0x6 LB: > { %s2744_s25 = sadd.s32 4294967295, %s2591_s24   ;;  %s2338_s26 = sadd.s32 4294967294, %s2591_s24   ;;  %s2591_s24 = sphi %s2729_s24, %s3843_s24   ;;  %s2587_s23 = sphi %s2727_s23, %s3842_s23   ;;  %s2583_s22 = sphi %s2725_s22, %s3841_s22   ;;  %s2579_s21 = sphi %s2723_s21, %s3840_s21  }
   0x7   : > { %s2748_s27 = sadd.s32 1, %s2591_s24   ;;  %s289_s28 = sadd.s32 1, %s2587_s23 }
   0x8   : > { %s286_s29 = ssub.s32 %s2591_s24, %s2748_s27  ;;  %p299_p0 = scmp.ne.s32.totalorder %s2587_s23, %s2583_s22 }
   0x9   : > { %p287_p1 = scmp.eq.s32.totalorder %s286_s29, 0  ;;  %p300_p2 = scmp.eq.s32.totalorder %s2744_s25, 1 }
   0xa   : > { %p305_p3 = scmp.ne.s32.totalorder %s2583_s22, %s2579_s21  ;;  %p306_p4 = scmp.eq.s32.totalorder %s2338_s26, 1 }
   0xb   : > { %s2759_s30 = scalar_select %p287_p1, %s2587_s23, %s289_s28  }
   0xc   : > { %p2761_p5 = por %p300_p2, %p299_p0  ;;  %p2765_p6 = por %p306_p4, %p305_p3 }
   0xd   : > { %p2341_p7 = scmp.ge.s32.totalorder %s2591_s24, 1  ;;  %p365_p8 = scmp.lt.s32.totalorder %s2591_s24, 3 }
   0xf   : > { %p366_p9 = pnand %p2341_p7, %p365_p8 }
  0x11   : > { %369 = sbr.rel (%p366_p9) target bundleno = 1520 (0x5f0), region = 68 }
  0x18   : > { %s3820_s1 = sld [smem:[#allocation10_spill]]  ;;  %v497_v1 = vld [vmem:[%s3795_s4] sm:$0xff]  ;;  %v2593_v2 = vmov 0   ;;  %v2594_v5 = vmov 7   ;;  %v2595_v6 = vmov 9   ;;  %p407_p10 = scmp.lt.s32.totalorder %s2744_s25, 1 }
  0x19   : > { %2470 = vset.pattern.permute.xlu0 %v2593_v2  ;;  %2471 = vset.pattern.permute.xlu1 %v2593_v2  ;;  %v482_v3 = vld [vmem:[%s3793_s2] sm:$0xf]  ;;  %v2596_v7 = vmov 14   ;;  %v3804_v8 = vmov 0.0   ;;  %v2598_v9 = vmov 10   ;;  %v2599_v10 = vmov 16  }
  0x1a   : > { %500 = vperm.xlu1 %2471, %v497_v1   ;;  %v2785_v4 = vld [vmem:[%s3796_s5] sm:$0xf]  ;;  %577 = vmatprep.mubr.f32.mxu0 %v3804_v8  ;;  %584 = vst [vmem:[#allocation2] sm:$0xf] %v3804_v8  ;;  %585 = vst [vmem:[#allocation2 + $0xc] sm:$0xf] %v3804_v8 }
  0x1b   : > { %2362 = vmatprep.subr.mxu1 %v3804_v8  ;;  %s408_s29 = scalar_select %p407_p10, %s2744_s25, 1  ;;  %v2600_v11 = vmov 11   ;;  %v2601_v12 = vmov 21   ;;  %v2602_v14 = vmov 18   ;;  %v2603_v15 = vmov 23  }
  0x1c   : > { %s3821_s0 = sld [smem:[#allocation9_spill]]  ;;  %vm416_vm0 = vcmask 1043456   ;;  %v2604_v17 = vmov 28   ;;  %v2605_v18 = vmov 17   ;;  %v2606_v23 = vmov 24   ;;  %s2644_s26 = smov 64  }
  0x1d   : > { %s2358_s15 = sshll.u32 %s408_s29, 3  ;;  %v2607_v24 = vmov 8   ;;  %v2608_v27 = vmov 35   ;;  %v2609_v28 = vmov 12   ;;  %v2610_v31 = vmov 22   ;;  %s2645_s28 = smov 48  }
  0x1e   : > { %v468_v0 = vld [vmem:[%s3820_s1] sm:$0xf]  ;;  %2472 = vset.pattern.permute.xlu1 %v2594_v5  ;;  %v2611_v32 = vmov 13   ;;  %v2612_v37 = vmov 44   ;;  %v2613_v38 = vmov 30   ;;  %v2614_v41 = vmov 27  }
  0x1f   : > { %471 = vperm.xlu0 %2470, %v468_v0   ;;  %638 = vperm.xlu1 %2472, %v2785_v4   ;;  %v2615_v42 = vmov 15   ;;  %v2616_v45 = vmov 39   ;;  %v2617_v46 = vmov 19   ;;  %v2618_v48 = vmov 45   ;;  %s2646_s29 = smov 80   ;;  %s2648_s16 = smov 112  }
  0x20   : > { %v2619_v50 = vmov 20   ;;  %v2620_v52 = vmov 40   ;;  %v2621_v53 = vmov 37   ;;  %v2622_v55 = vmov 47   ;;  %s2649_s17 = smov 96   ;;  %s2655_s19 = smov 45  }
  0x21   : > { %v2623_v56 = vmov 25   ;;  %v2624_v60 = vmov 2   ;;  %v2625_v62 = vmov 31   ;;  %v2626_v1 = vmov 1  }
  0x22   : > { %s2801_s18 = scalar_lea.vmem %s3821_s0, %s2358_s15  ;;  %vm505_vm1 = vcmask 31744   ;;  %s2647_s15 = smov 32   ;;  %vm659_vm2 = vcmask 916480   ;;  %vm687_vm3 = vcmask 785408   ;;  %vm715_vm4 = vcmask 654336  }
  0x23   : > { %485 = vperm.xlu0 %2470, %v482_v3   ;;  %2474 = vset.pattern.permute.xlu1 %v2596_v7  ;;  %v2806_v13 = vld [vmem:[%s2801_s18] sm:$0xff]  ;;  %v2627_v3 = vmov 42   ;;  %v2628_v7 = vmov 32   ;;  %vm743_vm5 = vcmask 523264   ;;  %vm770_vm6 = vcmask 392192  }
  0x24   : > { %666 = vperm.xlu1 %2474, %v2785_v4   ;;  %v414_v16 = vcombine.high %v2806_v13, %v2806_v13  ;;  %v417_v19 = vsel %vm416_vm0, %v2806_v13, 0.0  ;;  %vm797_vm7 = vcmask 261120   ;;  %vm825_vm8 = vcmask 416768  }
  0x25   : > { %v418_v21 = vrot.slane %v417_v19, 4  ;;  %vm1241_vm9 = vcmask 400384   ;;  %vm1636_vm14 = vcmask 384000  }
  0x26   : > { %v424_v20 = vsel %vm416_vm0, %v414_v16, 0.0  ;;  %v2630_v16 = vmov 38  }
  0x27   : > { %2473 = vset.pattern.permute.xlu0 %v2595_v6  ;;  %v425_v22 = vrot.slane %v424_v20, 4  ;;  %v419_v25 = vadd.f32 %v418_v21, %v417_v19  ;;  %v2631_v19 = vmov 29  }
  0x28   : > { %1060 = vperm.xlu0 %2473, %v2785_v4   ;;  %2475 = vset.pattern.permute.xlu1 %v2599_v10 }
  0x29   : > { %1087 = vperm.xlu1 %2475, %v2785_v4   ;;  %v426_v26 = vadd.f32 %v425_v22, %v424_v20  ;;  %v420_v29 = vrot.slane %v419_v25, 2  ;;  %v2632_v22 = vmov 33  }
  0x2b   : > { %v427_v30 = vrot.slane %v426_v26, 2  ;;  %v421_v33 = vadd.f32 %v420_v29, %v419_v25 }
  0x2c   : > { %2476 = vset.pattern.permute.xlu0 %v2598_v9 }
  0x2d   : > { %1268 = vperm.xlu0 %2476, %v2785_v4   ;;  %2477 = vset.pattern.permute.xlu1 %v2601_v12  ;;  %v428_v34 = vadd.f32 %v427_v30, %v426_v26  ;;  %v422_v35 = vrot.slane %v421_v33, 1  ;;  %v2629_v12 = vmov 26   ;;  %v3805_v26 = vlaneseq }
  0x2e   : > { %694 = vperm.xlu1 %2477, %v2785_v4  }
  0x2f   : > { %v429_v36 = vrot.slane %v428_v34, 1  ;;  %v423_v39 = vadd.f32 %v422_v35, %v421_v33  ;;  %v477_v30 = vshrl.u32 %v3805_v26, 7 }
  0x31   : > { %2479 = vset.pattern.permute.xlu0 %v2600_v11  ;;  %v430_v40 = vadd.f32 %v429_v36, %v428_v34  ;;  %v432_v43 = vmul.f32 0.25, %v423_v39  ;;  %v2636_v34 = vmov 46   ;;  %v2637_v39 = vmov 41  }
  0x32   : > { %1456 = vperm.xlu0 %2479, %v2785_v4   ;;  %2478 = vset.pattern.permute.xlu1 %v2603_v15 }
  0x33   : > { %1114 = vperm.xlu1 %2478, %v2785_v4   ;;  %v433_v44 = vmul.f32 0.25, %v430_v40 }
  0x35   : > { %v436_v47 = vcombine.low %v432_v43, %v433_v44 }
  0x36   : > { %2482 = vset.pattern.permute.xlu0 %v2602_v14 }
  0x37   : > { %1483 = vperm.xlu0 %2482, %v2785_v4   ;;  %2480 = vset.pattern.permute.xlu1 %v2605_v18  ;;  %v2830_v49 = vsub.f32 %v2806_v13, %v436_v47 }
  0x38   : > { %1295 = vperm.xlu1 %2480, %v2785_v4  }
  0x39   : > { %v439_v51 = vmul.f32 %v2830_v49, %v2830_v49 }
  0x3b   : > { %2485 = vset.pattern.permute.xlu0 %v2604_v17  ;;  %v441_v54 = vcombine.high %v439_v51, %v439_v51  ;;  %v443_v57 = vsel %vm416_vm0, %v439_v51, 0.0 }
  0x3c   : > { %724 = vperm.xlu0 %2485, %v2785_v4   ;;  %2481 = vset.pattern.permute.xlu1 %v2607_v24  ;;  %v444_v59 = vrot.slane %v443_v57, 4  ;;  %v2634_v24 = vmov 839922192  }
  0x3d   : > { %852 = vperm.xlu1 %2481, %v2785_v4   ;;  %v450_v58 = vsel %vm416_vm0, %v441_v54, 0.0  ;;  %v474_v25 = vunpack.c.l.s4 %v2634_v24 }
  0x3e   : > { %v451_v61 = vrot.slane %v450_v58, 4  ;;  %v445_v63 = vadd.f32 %v444_v59, %v443_v57 }
  0x3f   : > { %v475_v29 = vunpack.c.0.s8 %v474_v25  ;;  %v1344_v25 = vld [vmem:[#allocation2 + $0xc] sm:$0xf] }
  0x40   : > { %2488 = vset.pattern.permute.xlu0 %v2606_v23  ;;  %v452_v0 = vadd.f32 %v451_v61, %v450_v58  ;;  %v446_v5 = vrot.slane %v445_v63, 2  ;;  %v2633_v23 = vmov 34   ;;  %v2641_v58 = vmov 4  }
  0x41   : > { %1323 = vperm.xlu0 %2488, %v2785_v4   ;;  %2483 = vset.pattern.permute.xlu1 %v2609_v28  ;;  %v2642_v61 = vmov 5  }
  0x42   : > { %1663 = vperm.xlu1 %2483, %v2785_v4   ;;  %v453_v6 = vrot.slane %v452_v0, 2  ;;  %v447_v9 = vadd.f32 %v446_v5, %v445_v63 }
  0x44   : > { %v454_v10 = vadd.f32 %v453_v6, %v452_v0  ;;  %v448_v11 = vrot.slane %v447_v9, 1  ;;  %v722_v0 = vld [vmem:[#allocation2 + $0xc] sm:$0xf] }
  0x45   : > { %2491 = vset.pattern.permute.xlu0 %v2608_v27  ;;  %v2635_v27 = vmov 36  }
  0x46   : > { %751 = vperm.xlu0 %2491, %v2785_v4   ;;  %2484 = vset.pattern.permute.xlu1 %v2611_v32  ;;  %v455_v13 = vrot.slane %v454_v10, 1  ;;  %v449_v14 = vadd.f32 %v448_v11, %v447_v9  ;;  %v2855_v32 = vsub.s32 %v475_v29, %v477_v30 }
  0x47   : > { %1870 = vperm.xlu1 %2484, %v2785_v4  }
  0x48   : > { %v456_v15 = vadd.f32 %v455_v13, %v454_v10  ;;  %v457_v17 = vmul.f32 0.25, %v449_v14  ;;  %v1141_v10 = vld [vmem:[#allocation2 + $0xc] sm:$0xf] }
  0x4a   : > { %2494 = vset.pattern.permute.xlu0 %v2610_v31  ;;  %v458_v18 = vmul.f32 0.25, %v456_v15  ;;  %v459_v20 = vadd.f32 1e-06, %v457_v17 }
  0x4b   : > { %906 = vperm.xlu0 %2494, %v2785_v4   ;;  %2486 = vset.pattern.permute.xlu1 %v2613_v38 }
  0x4c   : > { %1143 = vperm.xlu1 %2486, %v2785_v4   ;;  %v460_v21 = vadd.f32 1e-06, %v458_v18  ;;  %2524 = vrsqrt.f32 %v459_v20  ;;  %v2933_v20 = vld [vmem:[#allocation2 + $0xc] sm:$0xf] }
  0x4e   : > { %2526 = vrsqrt.f32 %v460_v21 }
  0x4f   : > { %2497 = vset.pattern.permute.xlu0 %v2612_v37 }
  0x50   : > { %1195 = vperm.xlu0 %2497, %v2785_v4   ;;  %2487 = vset.pattern.permute.xlu1 %v2615_v42 }
  0x51   : > { %879 = vperm.xlu1 %2487, %v2785_v4  }
  0x54   : > { %2500 = vset.pattern.permute.xlu0 %v2614_v41 }
  0x55   : > { %1926 = vperm.xlu0 %2500, %v2785_v4   ;;  %2489 = vset.pattern.permute.xlu1 %v2617_v46 }
  0x56   : > { %1690 = vperm.xlu1 %2489, %v2785_v4   ;;  %v2525_v28 = vpop.eup %2524 }
  0x58   : > { %v2527_v31 = vpop.eup %2526 }
  0x59   : > { %2503 = vset.pattern.permute.xlu0 %v2616_v45  ;;  %v465_v33 = vcombine.low %v2525_v28, %v2527_v31  ;;  %v2638_v45 = vmov 43  }
  0x5a   : > { %1564 = vperm.xlu0 %2503, %v2785_v4   ;;  %2490 = vset.pattern.permute.xlu1 %v2619_v50  ;;  %v2639_v50 = vmov 48  }
  0x5b   : > { %1897 = vperm.xlu1 %2490, %v2785_v4   ;;  %v467_v37 = vmul.f32 %v465_v33, %v2830_v49 }
  0x5e   : > { %2506 = vset.pattern.permute.xlu0 %v2618_v48  ;;  %v496_v48 = vld [vmem:[%s3794_s3] sm:$0xff] }
  0x5f   : > { %1398 = vperm.xlu0 %2506, %v2785_v4   ;;  %2492 = vset.pattern.permute.xlu1 %v2621_v53 }
  0x60   : > { %1169 = vperm.xlu1 %2492, %v2785_v4  }
  0x63   : > { %2509 = vset.pattern.permute.xlu0 %v2620_v52 }
  0x64   : > { %1771 = vperm.xlu0 %2509, %v2785_v4   ;;  %2493 = vset.pattern.permute.xlu1 %v2623_v56 }
  0x65   : > { %1512 = vperm.xlu1 %2493, %v2785_v4  }
  0x68   : > { %2512 = vset.pattern.permute.xlu0 %v2622_v55  ;;  %v2640_v55 = vmov 3  }
  0x69   : > { %1797 = vperm.xlu0 %2512, %v2785_v4   ;;  %2495 = vset.pattern.permute.xlu1 %v2625_v62 }
  0x6a   : > { %1346 = vperm.xlu1 %2495, %v2785_v4  }
  0x6d   : > { %2515 = vset.pattern.permute.xlu0 %v2624_v60 }
  0x6e   : > { %1045 = vperm.xlu0 %2515, %v2785_v4   ;;  %2496 = vset.pattern.permute.xlu1 %v2627_v3 }
  0x6f   : > { %778 = vperm.xlu1 %2496, %v2785_v4  }
  0x72   : > { %2518 = vset.pattern.permute.xlu0 %v2626_v1  ;;  %v2643_v1 = vmov 6  }
  0x73   : > { %837 = vperm.xlu0 %2518, %v2785_v4   ;;  %2498 = vset.pattern.permute.xlu1 %v2628_v7 }
  0x74   : > { %1538 = vperm.xlu1 %2498, %v2785_v4  }
  0x77   : > { %2522 = vset.pattern.permute.xlu0 %v2593_v2 }
  0x78   : > { %2499 = vset.pattern.permute.xlu1 %v2629_v12 }
  0x79   : > { %1719 = vperm.xlu1 %2499, %v2785_v4  }
  0x7d   : > { %2501 = vset.pattern.permute.xlu1 %v2630_v16 }
  0x7e   : > { %1372 = vperm.xlu1 %2501, %v2785_v4  }
  0x82   : > { %2502 = vset.pattern.permute.xlu1 %v2631_v19 }
  0x83   : > { %935 = vperm.xlu1 %2502, %v2785_v4  }
  0x87   : > { %2504 = vset.pattern.permute.xlu1 %v2632_v22 }
  0x88   : > { %1745 = vperm.xlu1 %2504, %v2785_v4  }
  0x8c   : > { %2505 = vset.pattern.permute.xlu1 %v2633_v23 }
  0x8d   : > { %1952 = vperm.xlu1 %2505, %v2785_v4  }
  0x91   : > { %2507 = vset.pattern.permute.xlu1 %v2635_v27 }
  0x92   : > { %961 = vperm.xlu1 %2507, %v2785_v4  }
  0x96   : > { %2508 = vset.pattern.permute.xlu1 %v2636_v34 }
  0x97   : > { %1590 = vperm.xlu1 %2508, %v2785_v4  }
  0x99   : > { %v2858_v36 = vpop.permute.xlu1 %500 }
  0x9b   : > { %2510 = vset.pattern.permute.xlu1 %v2637_v39 }
  0x9c   : > { %1978 = vperm.xlu1 %2510, %v2785_v4  }
  0x9e   : > { %v472_v35 = vpop.permute.xlu0 %471  ;;  %v2864_v43 = vpop.permute.xlu1 %638 }
  0x9f   : > { %v479_v38 = vrot.slane %v472_v35, %v2855_v32 }
  0xa0   : > { %2511 = vset.pattern.permute.xlu1 %v2638_v45 }
  0xa1   : > { %v481_v41 = vmul.f32 %v479_v38, %v467_v37  ;;  %987 = vperm.xlu1 %2511, %v2785_v4  }
  0xa2   : > { %v486_v40 = vpop.permute.xlu0 %485 }
  0xa3   : > { %v493_v42 = vrot.slane %v486_v40, %v2855_v32  ;;  %v2872_v49 = vpop.permute.xlu1 %666 }
  0xa5   : > { %v495_v44 = vadd.f32 %v493_v42, %v481_v41  ;;  %2513 = vset.pattern.permute.xlu1 %v2639_v50  ;;  %v2964_v42 = vld [vmem:[#allocation2 + $0xc] sm:$0xf] }
  0xa6   : > { %2004 = vperm.xlu1 %2513, %v2785_v4  }
  0xa7   : > { %v504_v46 = vcombine.high %v495_v44, %v495_v44  ;;  %v2867_v47 = vpop.permute.xlu0 %1060 }
  0xa8   : > { %v2881_v52 = vpop.permute.xlu1 %1087 }
  0xa9   : > { %2345 = vmatprep.subr.msk.mxu0 %vm416_vm0, %v504_v46 }
  0xaa   : > { %2346 = vmatpush1.msk.msra.mxu0 %vm416_vm0, %v495_v44  ;;  %2514 = vset.pattern.permute.xlu1 %v2593_v2 }
  0xab   : > { %2347 = vmatmul.mubr.msk.f32.vlgmr.msra.gmra.mrb[0].mxu0 %vm505_vm1, %v496_v48  ;;  %623 = vperm.xlu1 %2514, %v2785_v4   ;;  %v2973_v48 = vld [vmem:[#allocation2 + $0xc] sm:$0xf] }
  0xac   : > { %v2878_v51 = vpop.permute.xlu0 %1268  ;;  %2243 = vmatprep.mubr.f32.mxu0 %v3804_v8 }
  0xad   : > { %v2887_v54 = vpop.permute.xlu1 %694 }
  0xaf   : > { %2516 = vset.pattern.permute.xlu1 %v2640_v55 }
  0xb0   : > { %1253 = vperm.xlu1 %2516, %v2785_v4  }
  0xb1   : > { %v2885_v53 = vpop.permute.xlu0 %1456 }
  0xb2   : > { %v2890_v56 = vpop.permute.xlu1 %1114 }
  0xb4   : > { %2517 = vset.pattern.permute.xlu1 %v2641_v58 }
  0xb5   : > { %1441 = vperm.xlu1 %2517, %v2785_v4  }
  0xb6   : > { %v2892_v57 = vpop.permute.xlu0 %1483 }
  0xb7   : > { %v2895_v59 = vpop.permute.xlu1 %1295 }
  0xb9   : > { %2519 = vset.pattern.permute.xlu1 %v2642_v61 }
  0xba   : > { %1648 = vperm.xlu1 %2519, %v2785_v4  }
  0xbb   : > { %v725_v60 = vpop.permute.xlu0 %724 }
  0xbc   : > { %v2899_v62 = vrot.slane %v725_v60, %v2855_v32  ;;  %v2901_v63 = vpop.permute.xlu1 %852 }
  0xbe   : > { %2520 = vset.pattern.permute.xlu1 %v2643_v1  ;;  %v735_v3 = vmul.f32 %v2899_v62, %v722_v0  ;;  %v933_v1 = vld [vmem:[#allocation2 + $0xc] sm:$0xf] }
  0xbf   : > { %1855 = vperm.xlu1 %2520, %v2785_v4  }
  0xc0   : > { %v2908_v6 = vpop.permute.xlu0 %1323 }
  0xc1   : > { %v2905_v5 = vpop.permute.xlu1 %1663 }
  0xc3   : > { %740 = vrot.lane.b32.xlu1 %v735_v3, %s2644_s26 }
  0xc4   : > { %2521 = vset.pattern.permute.xlu1 %v2593_v2 }
  0xc5   : > { %v752_v9 = vpop.permute.xlu0 %751 }
  0xc6   : > { %v2911_v7 = vpop.permute.xlu1 %1870  ;;  %v2917_v4 = vrot.slane %v752_v9, %v2855_v32 }
  0xc8   : > { %v762_v15 = vmul.f32 %v2917_v4, %v722_v0 }
  0xca   : > { %v2941_v24 = vpop.permute.xlu0 %906 }
  0xcb   : > { %v1144_v11 = vpop.permute.xlu1 %1143 }
  0xcc   : > { %v2914_v12 = vrot.slane %v1144_v11, %v2855_v32 }
  0xce   : > { %v1154_v13 = vmul.f32 %v2914_v12, %v1141_v10 }
  0xcf   : > { %v1196_v31 = vpop.permute.xlu0 %1195 }
  0xd0   : > { %v2920_v14 = vpop.permute.xlu1 %879  ;;  %1159 = vrot.lane.b32.xlu1 %v1154_v13, %s2644_s26  ;;  %v2953_v34 = vrot.slane %v1196_v31, %v2855_v32 }
  0xd2   : > { %v1206_v38 = vmul.f32 %v2953_v34, %v1141_v10 }
  0xd4   : > { %767 = vrot.lane.b32.xlu1 %v762_v15, %s2645_s28  ;;  %v1927_v41 = vpop.permute.xlu0 %1926 }
  0xd5   : > { %v2925_v2 = vpop.permute.xlu1 %1690  ;;  %v2971_v46 = vrot.slane %v1927_v41, %v2855_v32 }
  0xd7   : > { %v1937_v58 = vmul.f32 %v2971_v46, %v2973_v48 }
  0xd9   : > { %v1565_v61 = vpop.permute.xlu0 %1564 }
  0xda   : > { %v2927_v16 = vpop.permute.xlu1 %1897 }
  0xdf   : > { %v1170_v17 = vpop.permute.xlu1 %1169 }
  0xe0   : > { %v2930_v18 = vrot.slane %v1170_v17, %v2855_v32 }
  0xe2   : > { %v1180_v19 = vmul.f32 %v2930_v18, %v1141_v10  ;;  %v2989_v10 = vrot.slane %v1565_v61, %v2855_v32 }
  0xe4   : > { %v1513_v21 = vpop.permute.xlu1 %1512  ;;  %1185 = vrot.lane.b32.xlu1 %v1180_v19, %s2645_s28  ;;  %v1575_v15 = vmul.f32 %v2989_v10, %v2933_v20 }
  0xe5   : > { %v2937_v22 = vrot.slane %v1513_v21, %v2855_v32  ;;  %v1399_v21 = vpop.permute.xlu0 %1398 }
  0xe7   : > { %v1523_v23 = vmul.f32 %v2937_v22, %v2933_v20 }
  0xe9   : > { %v1347_v27 = vpop.permute.xlu1 %1346  ;;  %1528 = vrot.lane.b32.xlu0 %v1523_v23, %s2646_s29 }
  0xea   : > { %v2945_v28 = vrot.slane %v1347_v27, %v2855_v32 }
  0xec   : > { %v1357_v29 = vmul.f32 %v2945_v28, %v1344_v25 }
  0xee   : > { %v779_v30 = vpop.permute.xlu1 %778  ;;  %1362 = vrot.lane.b32.xlu0 %v1357_v29, %s2644_s26  ;;  %v3007_v29 = vrot.slane %v1399_v21, %v2855_v32 }
  0xef   : > { %v2950_v33 = vrot.slane %v779_v30, %v2855_v32 }
  0xf1   : > { %v789_v35 = vmul.f32 %v2950_v33, %v722_v0 }
  0xf3   : > { %v1539_v37 = vpop.permute.xlu1 %1538  ;;  %794 = vrot.lane.b32.xlu0 %v789_v35, %s2647_s15  ;;  %v1409_v35 = vmul.f32 %v3007_v29, %v1344_v25 }
  0xf4   : > { %v2959_v39 = vrot.slane %v1539_v37, %v2855_v32  ;;  %v1772_v37 = vpop.permute.xlu0 %1771 }
  0xf6   : > { %v1549_v40 = vmul.f32 %v2959_v39, %v2933_v20 }
  0xf7   : > { %1211 = vrot.lane.b32.xlu0 %v1206_v38, %s2647_s15 }
  0xf8   : > { %v1720_v44 = vpop.permute.xlu1 %1719  ;;  %1554 = vrot.lane.b32.xlu1 %v1549_v40, %s2644_s26  ;;  %v3017_v40 = vrot.slane %v1772_v37, %v2855_v32 }
  0xf9   : > { %v2968_v45 = vrot.slane %v1720_v44, %v2855_v32 }
  0xfb   : > { %v1730_v50 = vmul.f32 %v2968_v45, %v2964_v42 }
  0xfd   : > { %v1373_v55 = vpop.permute.xlu1 %1372  ;;  %1735 = vrot.lane.b32.xlu1 %v1730_v50, %s2646_s29  ;;  %v1782_v50 = vmul.f32 %v3017_v40, %v2964_v42 }
  0xfe   : > { %v2981_v60 = vrot.slane %v1373_v55, %v2855_v32 }
 0x100   : > { %v1383_v0 = vmul.f32 %v2981_v60, %v1344_v25 }
 0x101   : > { %1942 = vrot.lane.b32.xlu1 %v1937_v58, %s2646_s29 }
 0x102   : > { %v936_v3 = vpop.permute.xlu1 %935 }
 0x103   : > { %v2986_v9 = vrot.slane %v936_v3, %v2855_v32 }
 0x105   : > { %v946_v11 = vmul.f32 %v2986_v9, %v933_v1  ;;  %1388 = vrot.lane.b32.xlu1 %v1383_v0, %s2645_s28 }
 0x107   : > { %v1746_v13 = vpop.permute.xlu1 %1745  ;;  %951 = vrot.lane.b32.xlu0 %v946_v11, %s2644_s26 }
 0x108   : > { %v2997_v17 = vrot.slane %v1746_v13, %v2855_v32 }
 0x10a   : > { %v1756_v19 = vmul.f32 %v2997_v17, %v2964_v42 }
 0x10b   : > { %1580 = vrot.lane.b32.xlu0 %v1575_v15, %s2645_s28 }
 0x10c   : > { %v1953_v23 = vpop.permute.xlu1 %1952  ;;  %1761 = vrot.lane.b32.xlu1 %v1756_v19, %s2644_s26 }
 0x10d   : > { %v3004_v27 = vrot.slane %v1953_v23, %v2855_v32 }
 0x10f   : > { %v1963_v30 = vmul.f32 %v3004_v27, %v2973_v48 }
 0x111   : > { %v962_v31 = vpop.permute.xlu1 %961  ;;  %1968 = vrot.lane.b32.xlu1 %v1963_v30, %s2644_s26  ;;  %v646_v30 = vrot.slane %v2864_v43, %v2855_v32 }
 0x112   : > { %v3014_v38 = vrot.slane %v962_v31, %v2855_v32 }
 0x114   : > { %v972_v41 = vmul.f32 %v3014_v38, %v933_v1 }
 0x115   : > { %1414 = vrot.lane.b32.xlu1 %v1409_v35, %s2647_s15 }
 0x116   : > { %v1591_v44 = vpop.permute.xlu1 %1590  ;;  %977 = vrot.lane.b32.xlu0 %v972_v41, %s2645_s28 }
 0x117   : > { %v3025_v55 = vrot.slane %v1591_v44, %v2855_v32 }
 0x119   : > { %v1601_v25 = vmul.f32 %v3025_v55, %v2933_v20 }
 0x11a   : > { %1787 = vrot.lane.b32.xlu0 %v1782_v50, %s2645_s28  ;;  %v674_v50 = vrot.slane %v2872_v49, %v2855_v32 }
 0x11b   : > { %v1979_v58 = vpop.permute.xlu1 %1978  ;;  %1606 = vrot.lane.b32.xlu1 %v1601_v25, %s2647_s15 }
 0x11c   : > { %v3032_v61 = vrot.slane %v1979_v58, %v2855_v32  ;;  %v1095_v58 = vrot.slane %v2881_v52, %v2855_v32 }
 0x11e   : > { %v1989_v0 = vmul.f32 %v3032_v61, %v2973_v48 }
 0x120   : > { %v988_v3 = vpop.permute.xlu1 %987  ;;  %1994 = vrot.lane.b32.xlu1 %v1989_v0, %s2645_s28 }
 0x121   : > { %v3038_v11 = vrot.slane %v988_v3, %v2855_v32 }
 0x123   : > { %v998_v13 = vmul.f32 %v3038_v11, %v933_v1 }
 0x125   : > { %1003 = vrot.lane.b32.xlu0 %v998_v13, %s2647_s15  ;;  %v1276_v13 = vrot.slane %v2878_v51, %v2855_v32 }
 0x17e   : > { %v579_v20 = vpop.f32.mrb[0].mxu0 }
 0x17f   : > { %v3043_v15 = vadd.f32 %v579_v20, %v2858_v36  ;;  %v581_v19 = vpop.f32.mrb[1].mxu0  ;;  %v3085_v20 = vpop.permute.xlu1 %2004 }
 0x180   : > { %v3046_v21 = vadd.f32 %v581_v19, %v2858_v36  ;;  %v1068_v36 = vrot.slane %v2867_v47, %v2855_v32 }
 0x181   : > { %3822 = vst [vmem:[#allocation6_spill] sm:$0xff] %v3043_v15 }
 0x182   : > { %3823 = vst [vmem:[#allocation7_spill] sm:$0xff] %v3046_v21  ;;  %v3050_v23 = vcombine.high %v3043_v15, %v3046_v21 }
 0x184   : > { %590 = vst [vmem:[#allocation2 + $0x4] sm:$0xff] %v3050_v23 }
 0x18b   : > { %v3055_v1 = vld [vmem:[#allocation2] sm:$0xff]  ;;  %v3057_v31 = vld [vmem:[#allocation2 + $0x8] sm:$0xf] }
 0x18c   : > { %v649_v35 = vmul.f32 %v646_v30, %v3057_v31  ;;  %v648_v37 = vmul.f32 %v3055_v1, %v646_v30  ;;  %v3061_v41 = vld [vmem:[#allocation2 + $0x8] sm:$0xf]  ;;  %v1070_v44 = vmul.f32 %v3055_v1, %v1068_v36  ;;  %v677_v25 = vmul.f32 %v674_v50, %v3057_v31 }
 0x18d   : > { %v1071_v43 = vmul.f32 %v1068_v36, %v3061_v41  ;;  %v676_v47 = vmul.f32 %v3055_v1, %v674_v50  ;;  %v1098_v0 = vmul.f32 %v1095_v58, %v3061_v41  ;;  %v1097_v49 = vmul.f32 %v3055_v1, %v1095_v58  ;;  %v3081_v3 = vld [vmem:[#allocation2 + $0x8] sm:$0xf] }
 0x18e   : > { %654 = vrot.lane.b32.xlu1 %v649_v35, %s2648_s16  ;;  %652 = vrot.lane.b32.xlu0 %v648_v37, %s2648_s16  ;;  %v1279_v52 = vmul.f32 %v1276_v13, %v3081_v3  ;;  %v1278_v19 = vmul.f32 %v3055_v1, %v1276_v13  ;;  %v702_v30 = vrot.slane %v2887_v54, %v2855_v32  ;;  %v3095_v35 = vpop.permute.xlu1 %623  ;;  %v3123_v13 = vld [vmem:[#allocation2 + $0x8] sm:$0xf] }
 0x18f   : > { %v1122_v36 = vrot.slane %v2890_v56, %v2855_v32  ;;  %v1464_v50 = vrot.slane %v2885_v53, %v2855_v32  ;;  %v1303_v58 = vrot.slane %v2895_v59, %v2855_v32 }
 0x190   : > { %v705_v51 = vmul.f32 %v702_v30, %v3057_v31  ;;  %v704_v37 = vmul.f32 %v3055_v1, %v702_v30  ;;  %v1491_v30 = vrot.slane %v2892_v57, %v2855_v32 }
 0x191   : > { %v1124_v54 = vmul.f32 %v3055_v1, %v1122_v36  ;;  %v1306_v53 = vmul.f32 %v1303_v58, %v3081_v3 }
 0x192   : > { %1076 = vrot.lane.b32.xlu1 %v1071_v43, %s2648_s16  ;;  %1074 = vrot.lane.b32.xlu0 %v1070_v44, %s2648_s16  ;;  %v1125_v43 = vmul.f32 %v1122_v36, %v3061_v41  ;;  %v3105_v44 = vld [vmem:[#allocation2 + $0x8] sm:$0xf] }
 0x193   : > { %v1467_v56 = vmul.f32 %v1464_v50, %v3105_v44  ;;  %v3139_v36 = vld [vmem:[#allocation2 + $0x8] sm:$0xf] }
 0x196   : > { %682 = vrot.lane.b32.xlu1 %v677_v25, %s2649_s17  ;;  %680 = vrot.lane.b32.xlu0 %v676_v47, %s2649_s17  ;;  %v3109_v25 = vpop.permute.xlu1 %1253  ;;  %v1466_v47 = vmul.f32 %v1464_v50, %v3055_v1 }
 0x19a   : > { %1103 = vrot.lane.b32.xlu1 %v1098_v0, %s2649_s17  ;;  %1101 = vrot.lane.b32.xlu0 %v1097_v49, %s2649_s17  ;;  %v3119_v0 = vpop.permute.xlu1 %1441  ;;  %v1305_v49 = vmul.f32 %v3055_v1, %v1303_v58 }
 0x19e   : > { %1284 = vrot.lane.b32.xlu1 %v1279_v52, %s2648_s16  ;;  %1282 = vrot.lane.b32.xlu0 %v1278_v19, %s2648_s16  ;;  %v860_v52 = vrot.slane %v2901_v63, %v2855_v32  ;;  %v1493_v63 = vmul.f32 %v1491_v30, %v3055_v1 }
 0x1a0   : > { %v863_v59 = vmul.f32 %v860_v52, %v3123_v13  ;;  %v862_v19 = vmul.f32 %v3055_v1, %v860_v52  ;;  %v1153_v52 = vmul.f32 %v2914_v12, %v3050_v23  ;;  %v1331_v12 = vrot.slane %v2908_v6, %v2855_v32 }
 0x1a2   : > { %710 = vrot.lane.b32.xlu1 %v705_v51, %s2646_s29  ;;  %708 = vrot.lane.b32.xlu0 %v704_v37, %s2646_s29  ;;  %v3133_v51 = vpop.permute.xlu1 %1648  ;;  %v1494_v37 = vmul.f32 %v1491_v30, %v3105_v44 }
 0x1a6   : > { %1130 = vrot.lane.b32.xlu1 %v1125_v43, %s2646_s29  ;;  %1128 = vrot.lane.b32.xlu0 %v1124_v54, %s2646_s29  ;;  %v1671_v43 = vrot.slane %v2905_v5, %v2855_v32  ;;  %v3145_v57 = vpop.permute.xlu1 %1855 }
 0x1a8   : > { %v1674_v54 = vmul.f32 %v1671_v43, %v3139_v36  ;;  %v1673_v50 = vmul.f32 %v1671_v43, %v3055_v1 }
 0x1aa   : > { %1472 = vrot.lane.b32.xlu1 %v1467_v56, %s2648_s16  ;;  %1470 = vrot.lane.b32.xlu0 %v1466_v47, %s2648_s16  ;;  %v3149_v56 = vld [vmem:[#allocation2 + $0x8] sm:$0xf]  ;;  %v1878_v47 = vrot.slane %v2911_v7, %v2855_v32  ;;  %v3155_v5 = vpop.permute.xlu1 %740  ;;  %v734_v7 = vmul.f32 %v2899_v62, %v3050_v23 }
 0x1ac   : > { %v1881_v58 = vmul.f32 %v1878_v47, %v3149_v56 }
 0x1ae   : > { %1311 = vrot.lane.b32.xlu1 %v1306_v53, %s2649_s17  ;;  %1309 = vrot.lane.b32.xlu0 %v1305_v49, %s2649_s17  ;;  %v1880_v53 = vmul.f32 %v1878_v47, %v3055_v1  ;;  %v3161_v49 = vpop.permute.xlu0 %1797 }
 0x1b2   : > { %868 = vrot.lane.b32.xlu1 %v863_v59, %s2648_s16  ;;  %866 = vrot.lane.b32.xlu0 %v862_v19, %s2648_s16  ;;  %v887_v59 = vrot.slane %v2920_v14, %v2855_v32  ;;  %v3169_v19 = vpop.permute.xlu1 %1159  ;;  %v3179_v62 = vpop.permute.xlu0 %1045 }
 0x1b4   : > { %v890_v30 = vmul.f32 %v887_v59, %v3123_v13 }
 0x1b6   : > { %1499 = vrot.lane.b32.xlu1 %v1494_v37, %s2649_s17  ;;  %1497 = vrot.lane.b32.xlu0 %v1493_v63, %s2649_s17  ;;  %v889_v37 = vmul.f32 %v3055_v1, %v887_v59  ;;  %v1698_v63 = vrot.slane %v2925_v2, %v2855_v32  ;;  %v3181_v43 = vpop.permute.xlu1 %767  ;;  %v3191_v6 = vpop.permute.xlu0 %837  ;;  %v1522_v59 = vmul.f32 %v2937_v22, %v3050_v23 }
 0x1b8   : > { %v1700_v14 = vmul.f32 %v1698_v63, %v3055_v1 }
 0x1ba   : > { %1679 = vrot.lane.b32.xlu1 %v1674_v54, %s2648_s16  ;;  %1677 = vrot.lane.b32.xlu0 %v1673_v50, %s2648_s16  ;;  %v1333_v54 = vmul.f32 %v1331_v12, %v3050_v23  ;;  %v1905_v50 = vrot.slane %v2927_v16, %v2855_v32  ;;  %v3193_v2 = vpop.permute.xlu1 %1185  ;;  %v761_v16 = vmul.f32 %v2917_v4, %v3050_v23 }
 0x1bc   : > { %v1907_v47 = vmul.f32 %v1905_v50, %v3055_v1 }
 0x1be   : > { %1886 = vrot.lane.b32.xlu1 %v1881_v58, %s2648_s16  ;;  %1884 = vrot.lane.b32.xlu0 %v1880_v53, %s2648_s16  ;;  %v1701_v58 = vmul.f32 %v1698_v63, %v3139_v36  ;;  %v3199_v53 = vpop.permute.xlu0 %1528  ;;  %s2653_s16 = smov 50  }
 0x1c2   : > { %1157 = vrot.lane.b32.xlu1 %v1153_v52, %s2644_s26  ;;  %738 = vrot.lane.b32.xlu0 %v734_v7, %s2644_s26  ;;  %v3201_v52 = vpop.permute.xlu1 %1554  ;;  %v1908_v7 = vmul.f32 %v1905_v50, %v3149_v56  ;;  %v3214_v63 = vpop.permute.xlu0 %1362 }
 0x1c6   : > { %895 = vrot.lane.b32.xlu1 %v890_v30, %s2649_s17  ;;  %893 = vrot.lane.b32.xlu0 %v889_v37, %s2649_s17  ;;  %v1179_v30 = vmul.f32 %v2930_v18, %v3050_v23  ;;  %v914_v37 = vrot.slane %v2941_v24, %v2855_v32  ;;  %v3216_v12 = vpop.permute.xlu1 %1735  ;;  %v3224_v18 = vpop.permute.xlu0 %794  ;;  %v1548_v24 = vmul.f32 %v2959_v39, %v3050_v23 }
 0x1c7   : > { %v1205_v39 = vmul.f32 %v2953_v34, %v3050_v23 }
 0x1c8   : > { %v917_v4 = vmul.f32 %v914_v37, %v3123_v13 }
 0x1ca   : > { %1704 = vrot.lane.b32.xlu1 %v1700_v14, %s2649_s17  ;;  %1335 = vrot.lane.b32.xlu0 %v1333_v54, %s2646_s29  ;;  %v916_v14 = vmul.f32 %v3055_v1, %v914_v37  ;;  %v3226_v22 = vpop.permute.xlu1 %1942  ;;  %v1356_v54 = vmul.f32 %v2945_v28, %v3050_v23  ;;  %v3234_v50 = vpop.permute.xlu0 %1211  ;;  %v1574_v28 = vmul.f32 %v2989_v10, %v3050_v23 }
 0x1cb   : > { %v1408_v10 = vmul.f32 %v3007_v29, %v3050_v23  ;;  %v1382_v37 = vmul.f32 %v2981_v60, %v3050_v23  ;;  %v997_v60 = vmul.f32 %v3038_v11, %v3050_v23  ;;  %v1755_v29 = vmul.f32 %v2997_v17, %v3050_v23 }
 0x1cc   : > { %v631_v11 = vrot.slane %v3095_v35, %v2855_v32  ;;  %v1988_v35 = vmul.f32 %v3032_v61, %v3050_v23 }
 0x1ce   : > { %1911 = vrot.lane.b32.xlu1 %v1907_v47, %s2649_s17  ;;  %1706 = vrot.lane.b32.xlu0 %v1701_v58, %s2649_s17  ;;  %v1936_v47 = vmul.f32 %v2971_v46, %v3050_v23  ;;  %v788_v58 = vmul.f32 %v2950_v33, %v3050_v23  ;;  %v1962_v33 = vmul.f32 %v3004_v27, %v3050_v23 }
 0x1cf   : > { %v1729_v46 = vmul.f32 %v2968_v45, %v3050_v23 }
 0x1d2   : > { %765 = vrot.lane.b32.xlu1 %v761_v16, %s2645_s28  ;;  %1913 = vrot.lane.b32.xlu0 %v1908_v7, %s2649_s17  ;;  %v3240_v16 = vpop.permute.xlu1 %1388  ;;  %v3248_v7 = vpop.permute.xlu0 %951  ;;  %s2654_s17 = smov 46  }
 0x1d6   : > { %1526 = vrot.lane.b32.xlu1 %v1522_v59, %s2646_s29  ;;  %1183 = vrot.lane.b32.xlu0 %v1179_v30, %s2645_s28  ;;  %v3250_v59 = vpop.permute.xlu1 %1761  ;;  %v3258_v30 = vpop.permute.xlu0 %1580 }
 0x1da   : > { %922 = vrot.lane.b32.xlu1 %v917_v4, %s2646_s29  ;;  %920 = vrot.lane.b32.xlu0 %v916_v14, %s2646_s29  ;;  %v3262_v34 = vpop.permute.xlu1 %1968  ;;  %v3270_v27 = vpop.permute.xlu0 %977  ;;  %v971_v4 = vmul.f32 %v3014_v38, %v3050_v23  ;;  %v945_v14 = vmul.f32 %v2986_v9, %v3050_v23  ;;  %v1600_v38 = vmul.f32 %v3025_v55, %v3050_v23 }
 0x1db   : > { %v1053_v55 = vrot.slane %v3179_v62, %v2855_v32 }
 0x1de   : > { %1552 = vrot.lane.b32.xlu1 %v1548_v24, %s2644_s26  ;;  %1360 = vrot.lane.b32.xlu0 %v1356_v54, %s2644_s26  ;;  %v3272_v45 = vpop.permute.xlu1 %1414  ;;  %v3284_v24 = vpop.permute.xlu0 %1787  ;;  %v1805_v54 = vrot.slane %v3161_v49, %v2855_v32  ;;  %v2061_v49 = vld [vmem:[%s3797_s6] sm:$0xf] }
 0x1e0   : > { %v1808_v9 = vmul.f32 %v1805_v54, %v2964_v42  ;;  %v1781_v42 = vmul.f32 %v3017_v40, %v3050_v23  ;;  %v633_v40 = vmul.f32 %v3055_v1, %v631_v11  ;;  %v1807_v62 = vmul.f32 %v1805_v54, %v3050_v23 }
 0x1e2   : > { %1940 = vrot.lane.b32.xlu1 %v1936_v47, %s2646_s29  ;;  %792 = vrot.lane.b32.xlu0 %v788_v58, %s2647_s15  ;;  %v3288_v47 = vpop.permute.xlu1 %1606  ;;  %v3297_v17 = vpop.permute.xlu0 %1003 }
 0x1e6   : > { %1578 = vrot.lane.b32.xlu1 %v1574_v28, %s2645_s28  ;;  %1209 = vrot.lane.b32.xlu0 %v1205_v39, %s2647_s15  ;;  %v3304_v58 = vpop.permute.xlu1 %1994  ;;  %v634_v28 = vmul.f32 %v631_v11, %v3057_v31  ;;  %v2012_v31 = vrot.slane %v3085_v20, %v2855_v32  ;;  %v1055_v11 = vmul.f32 %v3055_v1, %v1053_v55 }
 0x1e7   : > { %3824 = vst [vmem:[#allocation8_spill] sm:$0xff] %v3304_v58 }
 0x1e8   : > { %v2014_v54 = vmul.f32 %v2012_v31, %v3050_v23 }
 0x1ea   : > { %1966 = vrot.lane.b32.xlu1 %v1962_v33, %s2644_s26  ;;  %1733 = vrot.lane.b32.xlu0 %v1729_v46, %s2646_s29  ;;  %s2651_s29 = smov 49  }
 0x1ee   : > { %1412 = vrot.lane.b32.xlu1 %v1408_v10, %s2647_s15  ;;  %1386 = vrot.lane.b32.xlu0 %v1382_v37, %s2645_s28 }
 0x1f2   : > { %975 = vrot.lane.b32.xlu1 %v971_v4, %s2645_s28  ;;  %949 = vrot.lane.b32.xlu0 %v945_v14, %s2644_s26  ;;  %v1056_v14 = vmul.f32 %v1053_v55, %v3061_v41 }
 0x1f6   : > { %1001 = vrot.lane.b32.xlu1 %v997_v60, %s2647_s15  ;;  %1759 = vrot.lane.b32.xlu0 %v1755_v29, %s2644_s26  ;;  %s2650_s26 = smov 51  }
 0x1fa   : > { %1813 = vrot.lane.b32.xlu1 %v1808_v9, %s2647_s15  ;;  %1604 = vrot.lane.b32.xlu0 %v1600_v38, %s2647_s15 }
 0x1fe   : > { %1785 = vrot.lane.b32.xlu0 %v1781_v42, %s2645_s28  ;;  %2064 = vperm.xlu1 %2521, %v2061_v49  }
 0x200   : > { %v655_v39 = vpop.permute.xlu1 %654  ;;  %v653_v33 = vpop.permute.xlu0 %652 }
 0x201   : > { %v657_v46 = vrot.slane %v655_v39, 4  ;;  %v664_v10 = vadd.f32 %v655_v39, %v634_v28  ;;  %v656_v37 = vrot.slane %v653_v33, 4 }
 0x202   : > { %1992 = vrot.lane.b32.xlu0 %v1988_v35, %s2645_s28 }
 0x203   : > { %v658_v4 = vsel %vm416_vm0, %v656_v37, %v657_v46 }
 0x204   : > { %v660_v60 = vsel %vm659_vm2, %v653_v33, %v658_v4  ;;  %v1077_v61 = vpop.permute.xlu1 %1076  ;;  %v1075_v29 = vpop.permute.xlu0 %1074  ;;  %v2015_v4 = vmul.f32 %v2012_v31, %v2973_v48 }
 0x205   : > { %v663_v9 = vadd.f32 %v660_v60, %v633_v40  ;;  %v1079_v38 = vrot.slane %v1077_v61, 4  ;;  %v1085_v49 = vadd.f32 %v1077_v61, %v1056_v14  ;;  %v1078_v42 = vrot.slane %v1075_v29, 4 }
 0x206   : > { %1811 = vrot.lane.b32.xlu0 %v1807_v62, %s2647_s15  ;;  %v1261_v40 = vrot.slane %v3109_v25, %v2855_v32 }
 0x207   : > { %v1080_v28 = vsel %vm416_vm0, %v1078_v42, %v1079_v38 }
 0x208   : > { %v1081_v41 = vsel %vm659_vm2, %v1075_v29, %v1080_v28  ;;  %v683_v39 = vpop.permute.xlu1 %682  ;;  %v681_v20 = vpop.permute.xlu0 %680  ;;  %v1264_v42 = vmul.f32 %v1261_v40, %v3081_v3 }
 0x209   : > { %v1084_v33 = vadd.f32 %v1081_v41, %v1055_v11  ;;  %v685_v35 = vrot.slane %v683_v39, 4  ;;  %v3327_v46 = vadd.f32 %v683_v39, %v664_v10  ;;  %v684_v37 = vrot.slane %v681_v20, 4 }
 0x20a   : > { %2018 = vrot.lane.b32.xlu0 %v2014_v54, %s2647_s15 }
 0x20b   : > { %v686_v55 = vsel %vm416_vm0, %v684_v37, %v685_v35 }
 0x20c   : > { %v688_v14 = vsel %vm687_vm3, %v681_v20, %v686_v55  ;;  %v1104_v62 = vpop.permute.xlu1 %1103  ;;  %v1102_v60 = vpop.permute.xlu0 %1101 }
 0x20d   : > { %v691_v61 = vadd.f32 %v688_v14, %v663_v9  ;;  %v1106_v23 = vrot.slane %v1104_v62, 4  ;;  %v3335_v29 = vadd.f32 %v1104_v62, %v1085_v49  ;;  %v1105_v10 = vrot.slane %v1102_v60, 4 }
 0x20e   : > { %2020 = vrot.lane.b32.xlu0 %v2015_v4, %s2647_s15  ;;  %v1263_v9 = vmul.f32 %v3055_v1, %v1261_v40  ;;  %s2652_s15 = smov 47  }
 0x20f   : > { %v1107_v38 = vsel %vm416_vm0, %v1105_v10, %v1106_v23 }
 0x210   : > { %v1108_v25 = vsel %vm687_vm3, %v1102_v60, %v1107_v38  ;;  %v1285_v11 = vpop.permute.xlu1 %1284  ;;  %v1283_v28 = vpop.permute.xlu0 %1282 }
 0x211   : > { %v1111_v48 = vadd.f32 %v1108_v25, %v1084_v33  ;;  %v1287_v31 = vrot.slane %v1285_v11, 4  ;;  %v3341_v41 = vadd.f32 %v1285_v11, %v1264_v42  ;;  %v1286_v39 = vrot.slane %v1283_v28, 4 }
 0x212   : > { %v1449_v33 = vrot.slane %v3119_v0, %v2855_v32 }
 0x213   : > { %v1288_v49 = vsel %vm416_vm0, %v1286_v39, %v1287_v31 }
 0x214   : > { %v1289_v20 = vsel %vm659_vm2, %v1283_v28, %v1288_v49  ;;  %v3346_v54 = vpop.permute.xlu1 %710  ;;  %v709_v35 = vpop.permute.xlu0 %708  ;;  %v1452_v42 = vmul.f32 %v1449_v33, %v3105_v44  ;;  %v845_v49 = vrot.slane %v3191_v6, %v2855_v32 }
 0x215   : > { %v1292_v37 = vadd.f32 %v1289_v20, %v1263_v9  ;;  %v713_v3 = vrot.slane %v3346_v54, 4  ;;  %v712_v55 = vrot.slane %v709_v35, 4 }
 0x217   : > { %v714_v4 = vsel %vm416_vm0, %v712_v55, %v713_v3 }
 0x218   : > { %v716_v14 = vsel %vm715_vm4, %v709_v35, %v714_v4  ;;  %v3353_v40 = vpop.permute.xlu1 %1130  ;;  %v1129_v62 = vpop.permute.xlu0 %1128 }
 0x219   : > { %v3355_v60 = vadd.f32 %v716_v14, %v691_v61  ;;  %v1133_v23 = vrot.slane %v3353_v40, 4  ;;  %v1132_v10 = vrot.slane %v1129_v62, 4  ;;  %v1451_v61 = vmul.f32 %v1449_v33, %v3055_v1 }
 0x21b   : > { %v1134_v38 = vsel %vm416_vm0, %v1132_v10, %v1133_v23 }
 0x21c   : > { %v1135_v25 = vsel %vm715_vm4, %v1129_v62, %v1134_v38  ;;  %v1473_v11 = vpop.permute.xlu1 %1472  ;;  %v1471_v0 = vpop.permute.xlu0 %1470  ;;  %v848_v62 = vmul.f32 %v845_v49, %v3123_v13 }
 0x21d   : > { %v3361_v28 = vadd.f32 %v1135_v25, %v1111_v48  ;;  %v1475_v31 = vrot.slane %v1473_v11, 4  ;;  %v3363_v39 = vadd.f32 %v1473_v11, %v1452_v42  ;;  %v1474_v9 = vrot.slane %v1471_v0, 4 }
 0x21e   : > { %v1656_v11 = vrot.slane %v3133_v51, %v2855_v32 }
 0x21f   : > { %v1476_v20 = vsel %vm416_vm0, %v1474_v9, %v1475_v31 }
 0x220   : > { %v1477_v35 = vsel %vm659_vm2, %v1471_v0, %v1476_v20  ;;  %v3370_v44 = vpop.permute.xlu1 %1311  ;;  %v1310_v3 = vpop.permute.xlu0 %1309  ;;  %v847_v0 = vmul.f32 %v3055_v1, %v845_v49  ;;  %v1659_v51 = vmul.f32 %v1656_v11, %v3139_v36 }
 0x221   : > { %v1480_v55 = vadd.f32 %v1477_v35, %v1451_v61  ;;  %v1314_v48 = vrot.slane %v3370_v44, 4  ;;  %v1313_v4 = vrot.slane %v1310_v3, 4 }
 0x223   : > { %v1315_v14 = vsel %vm416_vm0, %v1313_v4, %v1314_v48 }
 0x224   : > { %v1316_v33 = vsel %vm687_vm3, %v1310_v3, %v1315_v14  ;;  %v869_v23 = vpop.permute.xlu1 %868  ;;  %v867_v10 = vpop.permute.xlu0 %866  ;;  %v1863_v3 = vrot.slane %v3145_v57, %v2855_v32 }
 0x225   : > { %v1319_v6 = vadd.f32 %v1316_v33, %v1292_v37  ;;  %v871_v38 = vrot.slane %v869_v23, 4  ;;  %v3376_v42 = vadd.f32 %v869_v23, %v848_v62  ;;  %v870_v25 = vrot.slane %v867_v10, 4 }
 0x226   : > { %v1866_v32 = vmul.f32 %v1863_v3, %v3149_v56 }
 0x227   : > { %v872_v31 = vsel %vm416_vm0, %v870_v25, %v871_v38  ;;  %v1658_v38 = vmul.f32 %v1656_v11, %v3055_v1 }
 0x228   : > { %v873_v9 = vsel %vm659_vm2, %v867_v10, %v872_v31  ;;  %v3383_v61 = vpop.permute.xlu1 %1499  ;;  %v1498_v13 = vpop.permute.xlu0 %1497 }
 0x229   : > { %v3385_v20 = vadd.f32 %v873_v9, %v847_v0  ;;  %v1502_v37 = vrot.slane %v3383_v61, 4  ;;  %v1501_v35 = vrot.slane %v1498_v13, 4 }
 0x22b   : > { %v1503_v48 = vsel %vm416_vm0, %v1501_v35, %v1502_v37 }
 0x22c   : > { %v1504_v49 = vsel %vm687_vm3, %v1498_v13, %v1503_v48  ;;  %v1680_v4 = vpop.permute.xlu1 %1679  ;;  %v1678_v14 = vpop.permute.xlu0 %1677 }
 0x22d   : > { %v3393_v62 = vadd.f32 %v1504_v49, %v1480_v55  ;;  %v1682_v33 = vrot.slane %v1680_v4, 4  ;;  %v3395_v23 = vadd.f32 %v1680_v4, %v1659_v51  ;;  %v1681_v10 = vrot.slane %v1678_v14, 4 }
 0x22e   : > { %v1865_v55 = vmul.f32 %v1863_v3, %v3055_v1 }
 0x22f   : > { %v1683_v25 = vsel %vm416_vm0, %v1681_v10, %v1682_v33 }
 0x230   : > { %v1684_v57 = vsel %vm659_vm2, %v1678_v14, %v1683_v25  ;;  %v1887_v0 = vpop.permute.xlu1 %1886  ;;  %v1885_v36 = vpop.permute.xlu0 %1884 }
 0x231   : > { %v1687_v31 = vadd.f32 %v1684_v57, %v1658_v38  ;;  %v1889_v9 = vrot.slane %v1887_v0, 4  ;;  %v1895_v13 = vadd.f32 %v1887_v0, %v1866_v32  ;;  %v1888_v37 = vrot.slane %v1885_v36, 4 }
 0x233   : > { %v1890_v35 = vsel %vm416_vm0, %v1888_v37, %v1889_v9 }
 0x234   : > { %v1891_v48 = vsel %vm659_vm2, %v1885_v36, %v1890_v35  ;;  %v3404_v11 = vpop.permute.xlu1 %1157  ;;  %v739_v51 = vpop.permute.xlu0 %738 }
 0x235   : > { %v3406_v49 = vadd.f32 %v1891_v48, %v1865_v55  ;;  %v742_v56 = vrot.slane %v739_v51, 4 }
 0x237   : > { %v744_v4 = vsel %vm743_vm5, %v742_v56, %v739_v51 }
 0x238   : > { %v3410_v14 = vadd.f32 %v744_v4, %v3355_v60  ;;  %v3412_v33 = vpop.permute.xlu1 %895  ;;  %v3414_v10 = vpop.permute.xlu0 %893 }
 0x23c   : > { %v1705_v1 = vpop.permute.xlu1 %1704  ;;  %v1336_v3 = vpop.permute.xlu0 %1335 }
 0x23d   : > { %v1337_v38 = vrot.slane %v1336_v3, 4  ;;  %v1708_v36 = vrot.slane %v1705_v1, 4 }
 0x23f   : > { %v1338_v25 = vsel %vm715_vm4, %v1337_v38, %v1336_v3 }
 0x240   : > { %v3417_v32 = vadd.f32 %v1338_v25, %v1319_v6  ;;  %v3419_v57 = vpop.permute.xlu1 %1911  ;;  %v3421_v0 = vpop.permute.xlu0 %1706 }
 0x241   : > { %v1709_v9 = vrot.slane %v3421_v0, 4 }
 0x243   : > { %v1710_v60 = vsel %vm416_vm0, %v1708_v36, %v1709_v9 }
 0x244   : > { %v3425_v37 = vpop.permute.xlu1 %765  ;;  %v3427_v55 = vpop.permute.xlu0 %1913  ;;  %v1711_v35 = vsel %vm687_vm3, %v1705_v1, %v1710_v60  ;;  %v720_v1 = vadd.f32 %v3346_v54, %v3327_v46  ;;  %v1139_v54 = vadd.f32 %v3353_v40, %v3335_v29 }
 0x245   : > { %v3431_v48 = vadd.f32 %v3427_v55, %v1895_v13  ;;  %v3433_v6 = vadd.f32 %v1711_v35, %v1687_v31  ;;  %v3808_v36 = vrot.slane %v3425_v37, 4  ;;  %v3809_v13 = vrot.slane %v3404_v11, 4 }
 0x246   : > { %v745_v31 = vsel %vm743_vm5, %v742_v56, %v3155_v5 }
 0x247   : > { %v772_v60 = vsel %vm770_vm6, %v3808_v36, %v3181_v43  ;;  %v749_v26 = vadd.f32 %v745_v31, %v720_v1  ;;  %v1163_v5 = vsel %vm743_vm5, %v3809_v13, %v3169_v19 }
 0x248   : > { %v3435_v51 = vpop.permute.xlu1 %1526  ;;  %v3437_v4 = vpop.permute.xlu0 %1183  ;;  %v1167_v1 = vadd.f32 %v1163_v5, %v1139_v54  ;;  %v1320_v5 = vadd.f32 %v3370_v44, %v3341_v41 }
 0x249   : > { %v3815_v35 = vrot.slane %v3437_v4, 4  ;;  %v776_v56 = vadd.f32 %v772_v60, %v749_v26  ;;  %v1530_v41 = vrot.slane %v3435_v51, 4 }
 0x24a   : > { %v1342_v54 = vadd.f32 %v1337_v38, %v1320_v5 }
 0x24b   : > { %v1189_v43 = vsel %vm770_vm6, %v3815_v35, %v3193_v2 }
 0x24c   : > { %v3439_v3 = vpop.permute.xlu1 %922  ;;  %v3441_v25 = vpop.permute.xlu0 %920  ;;  %v1193_v29 = vadd.f32 %v1189_v43, %v1167_v1 }
 0x250   : > { %v3444_v9 = vpop.permute.xlu1 %1552  ;;  %v3446_v8 = vpop.permute.xlu0 %1360 }
 0x251   : > { %v3813_v26 = vrot.slane %v3446_v8, 4  ;;  %v1556_v38 = vrot.slane %v3444_v9, 4 }
 0x254   : > { %v3458_v21 = vpop.permute.xlu1 %1940  ;;  %v3460_v15 = vpop.permute.xlu0 %792 }
 0x255   : > { %v3810_v46 = vrot.slane %v3460_v15, 4 }
 0x257   : > { %v799_v31 = vsel %vm797_vm7, %v3810_v46, %v3224_v18 }
 0x258   : > { %v803_v36 = vadd.f32 %v799_v31, %v776_v56  ;;  %v3477_v58 = vpop.permute.xlu1 %1578  ;;  %v3479_v19 = vpop.permute.xlu0 %1209 }
 0x259   : > { %v3814_v13 = vrot.slane %v3479_v19, 4  ;;  %v1582_v46 = vrot.slane %v3477_v58, 4 }
 0x25a   : > { %823 = vrot.lane.b32.xlu1 %v803_v36, %s2650_s26  ;;  %v1366_v36 = vsel %vm743_vm5, %v3813_v26, %v3214_v63 }
 0x25b   : > { %v1215_v2 = vsel %vm797_vm7, %v3814_v13, %v3234_v50  ;;  %v1370_v1 = vadd.f32 %v1366_v36, %v1342_v54  ;;  %v1532_v54 = vsel %vm715_vm4, %v1530_v41, %v3199_v53  ;;  %v898_v53 = vrot.slane %v3412_v33, 4 }
 0x25c   : > { %v1219_v18 = vadd.f32 %v1215_v2, %v1193_v29  ;;  %v3488_v40 = vpop.permute.xlu1 %1966  ;;  %v3490_v60 = vpop.permute.xlu0 %1733 }
 0x25e   : > { %1239 = vrot.lane.b32.xlu0 %v1219_v18, %s2651_s29 }
 0x260   : > { %v3499_v56 = vpop.permute.xlu1 %1412  ;;  %v3501_v50 = vpop.permute.xlu0 %1386 }
 0x261   : > { %v3811_v43 = vrot.slane %v3499_v56, 4  ;;  %v3812_v31 = vrot.slane %v3501_v50, 4 }
 0x263   : > { %v1392_v44 = vsel %vm770_vm6, %v3812_v31, %v3240_v16  ;;  %v1418_v18 = vsel %vm797_vm7, %v3811_v43, %v3272_v45  ;;  %v1508_v16 = vadd.f32 %v3383_v61, %v3363_v39  ;;  %v1558_v45 = vsel %vm743_vm5, %v1556_v38, %v3201_v52 }
 0x264   : > { %v1396_v29 = vadd.f32 %v1392_v44, %v1370_v1  ;;  %v3510_v2 = vpop.permute.xlu1 %975  ;;  %v950_v63 = vpop.permute.xlu0 %949  ;;  %v904_v1 = vadd.f32 %v3412_v33, %v3376_v42  ;;  %v1584_v42 = vsel %vm770_vm6, %v1582_v46, %v3258_v30  ;;  %v925_v31 = vrot.slane %v3439_v3, 4 }
 0x265   : > { %v953_v5 = vrot.slane %v950_v63, 4  ;;  %v1536_v43 = vadd.f32 %v1532_v54, %v1508_v16  ;;  %v924_v52 = vrot.slane %v3441_v25, 4 }
 0x266   : > { %v1422_v36 = vadd.f32 %v1418_v18, %v1396_v29  ;;  %v897_v18 = vrot.slane %v3414_v10, 4  ;;  %v931_v39 = vadd.f32 %v3439_v3, %v904_v1  ;;  %v3825_v1 = vrot.slane %v3404_v11, 4 }
 0x267   : > { %v955_v29 = vsel %vm743_vm5, %v953_v5, %v3248_v7  ;;  %v1562_v26 = vadd.f32 %v1558_v45, %v1536_v43  ;;  %v3826_v3 = vrot.slane %v3510_v2, 4 }
 0x268   : > { %1430 = vrot.lane.b32.xlu1 %v1422_v36, %s2645_s28  ;;  %v3525_v44 = vpop.permute.xlu0 %1759  ;;  %v3534_v61 = vpop.permute.xlu1 %1001  ;;  %v959_v7 = vadd.f32 %v955_v29, %v931_v39  ;;  %v899_v54 = vsel %vm416_vm0, %v897_v18, %v898_v53  ;;  %v1162_v30 = vsel %vm743_vm5, %v3825_v1, %v3404_v11  ;;  %v1737_v36 = vrot.slane %v3490_v60, 4 }
 0x269   : > { %v1005_v33 = vrot.slane %v3534_v61, 4  ;;  %v1588_v16 = vadd.f32 %v1584_v42, %v1562_v26  ;;  %v981_v43 = vsel %vm770_vm6, %v3826_v3, %v3270_v27  ;;  %v1916_v29 = vrot.slane %v3427_v55, 4 }
 0x26a   : > { %v926_v53 = vsel %vm416_vm0, %v924_v52, %v925_v31  ;;  %v985_v26 = vadd.f32 %v981_v43, %v959_v7  ;;  %v900_v11 = vsel %vm687_vm3, %v3414_v10, %v899_v54  ;;  %v1763_v27 = vrot.slane %v3525_v44, 4 }
 0x26b   : > { %v1007_v42 = vsel %vm797_vm7, %v1005_v33, %v3297_v17  ;;  %v1915_v55 = vrot.slane %v3419_v57, 4  ;;  %v1531_v31 = vsel %vm715_vm4, %v1530_v41, %v3435_v51  ;;  %v3827_v10 = vrot.slane %v3437_v4, 4 }
 0x26c   : > { %v1605_v13 = vpop.permute.xlu0 %1604  ;;  %v927_v17 = vsel %vm715_vm4, %v3441_v25, %v926_v53  ;;  %v903_v51 = vadd.f32 %v900_v11, %v3385_v20  ;;  %v1715_v41 = vadd.f32 %v3421_v0, %v3395_v23  ;;  %v3828_v25 = vrot.slane %v3479_v19, 4 }
 0x26d   : > { %v1608_v35 = vrot.slane %v1605_v13, 4  ;;  %v1188_v52 = vsel %vm770_vm6, %v3827_v10, %v3437_v4  ;;  %v1917_v54 = vsel %vm416_vm0, %v1915_v55, %v1916_v29  ;;  %v1557_v4 = vsel %vm743_vm5, %v1556_v38, %v3444_v9 }
 0x26e   : > { %v1765_v20 = vsel %vm743_vm5, %v1763_v27, %v3250_v59  ;;  %v1535_v23 = vadd.f32 %v1531_v31, %v3393_v62  ;;  %v930_v3 = vadd.f32 %v927_v17, %v903_v51  ;;  %v1918_v9 = vsel %vm687_vm3, %v3419_v57, %v1917_v54 }
 0x26f   : > { %v1610_v45 = vsel %vm797_vm7, %v1608_v35, %v3288_v47  ;;  %v1166_v47 = vadd.f32 %v1162_v30, %v3361_v28  ;;  %v1739_v28 = vsel %vm715_vm4, %v1737_v36, %v3216_v12  ;;  %v1214_v12 = vsel %vm797_vm7, %v3828_v25, %v3479_v19 }
 0x270   : > { %v1614_v18 = vadd.f32 %v1610_v45, %v1588_v16  ;;  %v3556_v39 = vpop.permute.xlu0 %1785  ;;  %v1011_v16 = vadd.f32 %v1007_v42, %v985_v26  ;;  %v954_v30 = vsel %vm743_vm5, %v953_v5, %v950_v63  ;;  %v1743_v43 = vadd.f32 %v1739_v28, %v1715_v41 }
 0x271   : > { %v1789_v7 = vrot.slane %v3556_v39, 4  ;;  %v1192_v0 = vadd.f32 %v1188_v52, %v1166_v47  ;;  %v1944_v19 = vrot.slane %v3458_v21, 4  ;;  %v1583_v63 = vsel %vm770_vm6, %v1582_v46, %v3477_v58  ;;  %v1814_v47 = vpop.permute.xlu1 %1813 }
 0x272   : > { %1634 = vrot.lane.b32.xlu0 %v1614_v18, %s2652_s15  ;;  %v1561_v62 = vadd.f32 %v1557_v4, %v1535_v23  ;;  %v958_v5 = vadd.f32 %v954_v30, %v930_v3  ;;  %v1769_v45 = vadd.f32 %v1765_v20, %v1743_v43  ;;  %v3829_v53 = vrot.slane %v3425_v37, 4 }
 0x273   : > { %v1791_v59 = vsel %vm770_vm6, %v1789_v7, %v3284_v24  ;;  %v3609_v38 = vadd.f32 %v1214_v12, %v1192_v0  ;;  %v1970_v26 = vrot.slane %v3488_v40, 4  ;;  %v1609_v58 = vsel %vm797_vm7, %v1608_v35, %v1605_v13 }
 0x274   : > { %v3585_v1 = vpop.permute.xlu0 %1992  ;;  %v771_v57 = vsel %vm770_vm6, %v3829_v53, %v3425_v37  ;;  %v3830_v18 = vrot.slane %v3446_v8, 4  ;;  %v1921_v11 = vadd.f32 %v1918_v9, %v3406_v49  ;;  %v1587_v42 = vadd.f32 %v1583_v63, %v1561_v62 }
 0x275   : > { %v1795_v55 = vadd.f32 %v1791_v59, %v1769_v45  ;;  %v1945_v37 = vsel %vm715_vm4, %v1944_v19, %v3458_v21  ;;  %v3831_v13 = vrot.slane %v3510_v2, 4  ;;  %v3832_v31 = vrot.slane %v3460_v15, 4  ;;  %v3835_v45 = vld [vmem:[#allocation8_spill] sm:$0xff] }
 0x276   : > { %1031 = vrot.lane.b32.xlu0 %v1011_v16, %s2653_s16  ;;  %v1365_v24 = vsel %vm743_vm5, %v3830_v18, %v3446_v8  ;;  %v1996_v8 = vrot.slane %v3585_v1, 4  ;;  %v1613_v17 = vadd.f32 %v1609_v58, %v1587_v42  ;;  %v1971_v41 = vsel %vm743_vm5, %v1970_v26, %v3488_v40 }
 0x277   : > { %v980_v35 = vsel %vm770_vm6, %v3831_v13, %v3510_v2  ;;  %v798_v10 = vsel %vm797_vm7, %v3832_v31, %v3460_v15  ;;  %v3833_v54 = vrot.slane %v3501_v50, 4  ;;  %v1006_v16 = vsel %vm797_vm7, %v1005_v33, %v3534_v61 }
 0x278   : > { %v1812_v29 = vpop.permute.xlu0 %1811  ;;  %v984_v52 = vadd.f32 %v980_v35, %v958_v5  ;;  %v775_v15 = vadd.f32 %v771_v57, %v3410_v14  ;;  %v1369_v25 = vadd.f32 %v1365_v24, %v3417_v32  ;;  %v1949_v12 = vadd.f32 %v1945_v37, %v1921_v11 }
 0x279   : > { %v1815_v46 = vrot.slane %v1812_v29, 4  ;;  %v1391_v2 = vsel %vm770_vm6, %v3833_v54, %v3501_v50  ;;  %v1738_v40 = vsel %vm715_vm4, %v1737_v36, %v3490_v60  ;;  %v1997_v50 = vsel %vm770_vm6, %v1996_v8, %v3585_v1 }
 0x27a   : > { %1235 = vrot.lane.b32.xlu0 %v3609_v38, %s2651_s29  ;;  %v802_v61 = vadd.f32 %v798_v10, %v775_v15  ;;  %v1975_v33 = vadd.f32 %v1971_v41, %v1949_v12  ;;  %v1395_v30 = vadd.f32 %v1391_v2, %v1369_v25  ;;  %v1010_v14 = vadd.f32 %v1006_v16, %v984_v52 }
 0x27b   : > { %v1817_v49 = vsel %vm797_vm7, %v1815_v46, %v1814_v47  ;;  %v1764_v32 = vsel %vm743_vm5, %v1763_v27, %v3525_v44  ;;  %v1742_v23 = vadd.f32 %v1738_v40, %v3433_v6  ;;  %v3834_v60 = vrot.slane %v3499_v56, 4 }
 0x27c   : > { %v1821_v28 = vadd.f32 %v1817_v49, %v1795_v55  ;;  %v2019_v51 = vpop.permute.xlu0 %2018  ;;  %v2001_v0 = vadd.f32 %v1997_v50, %v1975_v33  ;;  %v1790_v1 = vsel %vm770_vm6, %v1789_v7, %v3556_v39  ;;  %v1816_v6 = vsel %vm797_vm7, %v1815_v46, %v1812_v29 }
 0x27d   : > { %v2022_v4 = vrot.slane %v2019_v51, 4  ;;  %v1417_v36 = vsel %vm797_vm7, %v3834_v60, %v3499_v56  ;;  %v1768_v27 = vadd.f32 %v1764_v32, %v1742_v23  ;;  %v818_v9 = vcombine.high %v802_v61, %v802_v61  ;;  %v3695_v58 = vpop.permute.xlu1 %2064 }
 0x27e   : > { %1630 = vrot.lane.b32.xlu0 %v1613_v17, %s2652_s15  ;;  %1841 = vrot.lane.b32.xlu1 %v1821_v28, %s2654_s17  ;;  %v1421_v44 = vadd.f32 %v1417_v36, %v1395_v30  ;;  %v1946_v56 = vsel %vm715_vm4, %v1944_v19, %v3226_v22  ;;  %v1234_v39 = vcombine.high %v3609_v38, %v3609_v38  ;;  %v3836_v37 = vlaneseq }
 0x27f   : > { %v2023_v20 = vsel %vm797_vm7, %v2022_v4, %v2019_v51  ;;  %v1794_v43 = vadd.f32 %v1790_v1, %v1768_v27  ;;  %v1972_v59 = vsel %vm743_vm5, %v1970_v26, %v3262_v34  ;;  %v1950_v62 = vadd.f32 %v1946_v56, %v3431_v48 }
 0x280   : > { %v2027_v3 = vadd.f32 %v2023_v20, %v2001_v0  ;;  %v1425_v7 = vcombine.high %v1421_v44, %v1421_v44  ;;  %v2021_v5 = vpop.permute.xlu0 %2020  ;;  %v1998_v29 = vsel %vm770_vm6, %v1996_v8, %v3835_v45  ;;  %v1629_v21 = vcombine.high %v1613_v17, %v1613_v17 }
 0x281   : > { %v1820_v63 = vadd.f32 %v1816_v6, %v1794_v43  ;;  %v1976_v22 = vadd.f32 %v1972_v59, %v1950_v62  ;;  %v2024_v19 = vsel %vm797_vm7, %v2022_v4, %v2021_v5  ;;  %v1026_v34 = vcombine.high %v1010_v14, %v1010_v14 }
 0x282   : > { %1027 = vrot.lane.b32.xlu0 %v1010_v14, %s2653_s16  ;;  %819 = vrot.lane.b32.xlu1 %v802_v61, %s2650_s26  ;;  %v2043_v57 = vcombine.high %v2027_v3, %v2027_v3  ;;  %v593_v13 = vand.u32 127, %v3836_v37  ;;  %vm1843_vm4 = vcmask 375808   ;;  %vm1033_vm5 = vcmask 408576  }
 0x283   : > { %v1836_v53 = vcombine.high %v1820_v63, %v1820_v63  ;;  %v2002_v38 = vadd.f32 %v1998_v29, %v1976_v22 }
 0x284   : > { %v594_v49 = vadd.s32 128, %v593_v13  ;;  %v599_v52 = vand.u32 15, %v593_v13 }
 0x285   : > { %v2028_v48 = vadd.f32 %v2024_v19, %v2002_v38 }
 0x286   : > { %2044 = vrot.lane.b32.xlu0 %v2027_v3, %s2655_s19  ;;  %1426 = vrot.lane.b32.xlu1 %v1421_v44, %s2645_s28  ;;  %v606_v17 = vand.u32 15, %v594_v49  ;;  %v1220_v28 = vadd.s32 4294967295, %v599_v52  ;;  %v804_v54 = vadd.s32 4294967293, %v599_v52  ;;  %v1615_v25 = vadd.s32 1, %v599_v52 }
 0x287   : > { %v1822_v32 = vadd.s32 2, %v599_v52  ;;  %v1012_v60 = vadd.s32 4294967294, %v599_v52 }
 0x288   : > { %v1221_v51 = vadd.s32 4294967295, %v606_v17  ;;  %v805_v2 = vadd.s32 4294967293, %v606_v17  ;;  %vm1222_vm10 = vcmp.ge.s32.totalorder %v1220_v28, 0  ;;  %vm806_vm12 = vcmp.ge.s32.totalorder %v804_v54, 0 }
 0x289   : > { %v1616_v12 = vadd.s32 1, %v606_v17  ;;  %v1013_v36 = vadd.s32 4294967294, %v606_v17  ;;  %vm1619_vm15 = vcmp.lt.s32.totalorder %v1615_v25, 16  ;;  %v1823_v27 = vadd.s32 2, %v606_v17  ;;  %v2078_v25 = vld [vmem:[%s3798_s7] sm:$0xf] }
 0x28a   : > { %1837 = vrot.lane.b32.xlu1 %v1820_v63, %s2654_s17  ;;  %821 = vrot.lane.b32.xlu0 %v818_v9, %s2650_s26  ;;  %vm1223_vm11 = vcmp.ge.s32.totalorder %v1221_v51, 0  ;;  %vm807_vm13 = vcmp.ge.s32.totalorder %v805_v2, 0  ;;  %vm1826_vm3 = vcmp.lt.s32.totalorder %v1822_v32, 16  ;;  %v2029_v9 = vadd.s32 3, %v599_v52  ;;  %v3838_v51 = vld [vmem:[#allocation7_spill] sm:$0xff]  ;;  %s404_s26 = sand.u32 1, %s2583_s22  }
 0x28b   : > { %vm1620_vm2 = vcmp.lt.s32.totalorder %v1616_v12, 16  ;;  %v2030_v63 = vadd.s32 3, %v606_v17  ;;  %vm1014_vm7 = vcmp.ge.s32.totalorder %v1012_v60, 0  ;;  %v3837_v17 = vld [vmem:[#allocation6_spill] sm:$0xff]  ;;  %s2265_s0 = scalar_lea.sflag [#allocation4], %s404_s26 }
 0x28e   : > { %1237 = vrot.lane.b32.xlu1 %v1234_v39, %s2651_s29  ;;  %1428 = vrot.lane.b32.xlu0 %v1425_v7, %s2645_s28  ;;  %s2342_s29 = sshll.u32 %s404_s26, 3 }
 0x292   : > { %1632 = vrot.lane.b32.xlu1 %v1629_v21, %s2652_s15  ;;  %1839 = vrot.lane.b32.xlu0 %v1836_v53, %s2654_s17  ;;  %s2359_s15 = sshll.u32 %s2744_s25, 7  ;;  %s2657_s25 = smov [#allocation3]  }
 0x293   : > { %s3749_s20 = scalar_lea.hbm %s3803_s12, %s2359_s15 }
 0x296   : > { %1029 = vrot.lane.b32.xlu1 %v1026_v34, %s2653_s16  ;;  %2048 = vrot.lane.b32.xlu0 %v2028_v48, %s2655_s19  ;;  %s406_s16 = scalar_lea.vmem [#allocation3], %s2342_s29 }
 0x297   : > { %s2279_s17 = sshll.u32 %s406_s16, 4  ;;  %s3751_s17 = int_to_ptr.vmem [resolvable:$true] %s2279_s17 }
 0x298   : > { %s2529_s1 = scalar_lea.vmem %s3751_s17, 128 }
 0x299   : > { %p2530_p11 = scmp.ne.s32.totalorder %s3751_s17, %s2529_s1 }
 0x29a   : > { %2046 = vrot.lane.b32.xlu1 %v2043_v57, %s2655_s19 }
 0x29b   : > { %p2531_p12 = pnand %p2530_p11, %p2761_p5 }
 0x29d   : > { %p2532_p13 = pneg %p2531_p12 }
 0x2cc   : > { %v824_v18 = vpop.permute.xlu1 %823 }
 0x2d0   : > { %v1240_v26 = vpop.permute.xlu0 %1239 }
 0x2da   : > { %v1431_v11 = vpop.permute.xlu1 %1430 }
 0x2e4   : > { %v1635_v46 = vpop.permute.xlu0 %1634 }
 0x2e8   : > { %v3697_v24 = vpop.permute.xlu0 %1031 }
 0x2ec   : > { %v1236_v42 = vpop.permute.xlu0 %1235 }
 0x2f0   : > { %v3699_v47 = vpop.permute.xlu1 %1841  ;;  %v1631_v55 = vpop.permute.xlu0 %1630 }
 0x2f4   : > { %v1028_v35 = vpop.permute.xlu0 %1027  ;;  %v820_v8 = vpop.permute.xlu1 %819 }
 0x2f8   : > { %v3702_v31 = vpop.permute.xlu0 %2044  ;;  %v1427_v10 = vpop.permute.xlu1 %1426 }
 0x2fc   : > { %v1838_v41 = vpop.permute.xlu1 %1837  ;;  %v822_v16 = vpop.permute.xlu0 %821 }
 0x2fd   : > { %v826_v40 = vsel %vm825_vm8, %v820_v8, %v822_v16  ;;  %v827_v50 = vsel %vm825_vm8, %v822_v16, %v824_v18  ;;  %vm1015_vm8 = vcmp.ge.s32.totalorder %v1013_v36, 0  ;;  %v3839_v16 = vmov 0.0  }
 0x2fe   : > { %v830_v20 = vsel %vm806_vm12, %v826_v40, 0.0  ;;  %v831_v23 = vsel %vm807_vm13, %v827_v50, 0.0  ;;  %vm2656_vm12 = vmmov 0  }
 0x2ff   : > { %2364 = vmatprep.mubr.msk.f32.mxu1 %vm2656_vm12, %v3839_v16 }
 0x300   : > { %v1238_v4 = vpop.permute.xlu1 %1237  ;;  %v1429_v15 = vpop.permute.xlu0 %1428 }
 0x301   : > { %v1242_v61 = vsel %vm1241_vm9, %v1236_v42, %v1238_v4  ;;  %v1243_v33 = vsel %vm1241_vm9, %v1238_v4, %v1240_v26  ;;  %v1432_v56 = vsel %vm770_vm6, %v1427_v10, %v1429_v15  ;;  %v1433_v39 = vsel %vm770_vm6, %v1429_v15, %v1431_v11 }
 0x302   : > { %v1246_v30 = vsel %vm1222_vm10, %v1242_v61, 0.0  ;;  %v1247_v14 = vsel %vm1223_vm11, %v1243_v33, 0.0  ;;  %vm1827_vm9 = vcmp.lt.s32.totalorder %v1823_v27, 16  ;;  %vm2050_vm10 = vcmask 367616   ;;  %v2164_v61 = vld [vmem:[%s3801_s10] sm:$0xf] }
 0x303   : > { %v1248_v1 = vadd.f32 %v1246_v30, %v830_v20  ;;  %v1249_v44 = vadd.f32 %v1247_v14, %v831_v23  ;;  %vm2033_vm6 = vcmp.lt.s32.totalorder %v2029_v9, 16  ;;  %vm2034_vm11 = vcmp.lt.s32.totalorder %v2030_v63, 16  ;;  %v2250_v33 = vld [vmem:[%s3802_s11] sm:$0xf] }
 0x304   : > { %v1633_v0 = vpop.permute.xlu1 %1632  ;;  %v1840_v3 = vpop.permute.xlu0 %1839  ;;  %v2163_v20 = vld [vmem:[%s3800_s9] sm:$0xf] }
 0x305   : > { %v1637_v6 = vsel %vm1636_vm14, %v1631_v55, %v1633_v0  ;;  %v1638_v43 = vsel %vm1636_vm14, %v1633_v0, %v1635_v46  ;;  %v1436_v59 = vadd.f32 %v1432_v56, %v1248_v1  ;;  %v1437_v62 = vadd.f32 %v1433_v39, %v1249_v44 }
 0x306   : > { %v1641_v29 = vsel %vm1619_vm15, %v1637_v6, 0.0  ;;  %v1642_v21 = vsel %vm1620_vm2, %v1638_v43, 0.0  ;;  %v1844_v53 = vsel %vm1843_vm4, %v1838_v41, %v1840_v3  ;;  %v1845_v22 = vsel %vm1843_vm4, %v1840_v3, %v3699_v47  ;;  %v2528_v43 = vld [vmem:[%s2801_s18] sm:$0xff]  ;;  %s2533_s18 = sshll.u32 %s2657_s25, 4  ;;  %s2534_s18 = int_to_ptr.vmem [resolvable:$false] %s2533_s18 }
 0x307   : > { %v1643_v57 = vadd.f32 %v1641_v29, %v1436_v59  ;;  %v1644_v26 = vadd.f32 %v1642_v21, %v1437_v62  ;;  %v1849_v11 = vsel %vm1827_vm9, %v1845_v22, 0.0  ;;  %s2535_s29 = scalar_lea.vmem %s2534_s18, 256  ;;  %p2536_p0 = scmp.lt.s32.totalorder %s3751_s17, %s2534_s18 }
 0x308   : > { %v1030_v7 = vpop.permute.xlu1 %1029  ;;  %v2049_v34 = vpop.permute.xlu0 %2048  ;;  %p2537_p1 = scmp.lt.s32.totalorder %s2535_s29, %s2529_s1 }
 0x309   : > { %v1034_v5 = vsel %vm1033_vm5, %v1028_v35, %v1030_v7  ;;  %v1035_v45 = vsel %vm1033_vm5, %v1030_v7, %v3697_v24  ;;  %v1848_v24 = vsel %vm1826_vm3, %v1844_v53, 0.0 }
 0x30a   : > { %v1038_v19 = vsel %vm1014_vm7, %v1034_v5, 0.0  ;;  %v1039_v38 = vsel %vm1015_vm8, %v1035_v45, 0.0  ;;  %p2538_p2 = por %p2537_p1, %p2536_p0 }
 0x30b   : > { %v1850_v37 = vadd.f32 %v1848_v24, %v1038_v19  ;;  %v1851_v13 = vadd.f32 %v1849_v11, %v1039_v38 }
 0x30c   : > { %v2047_v48 = vpop.permute.xlu1 %2046  ;;  %p2539_p3 = pnand %p2538_p2, %p2532_p13 }
 0x30d   : > { %v2051_v46 = vsel %vm2050_vm10, %v3702_v31, %v2047_v48  ;;  %v2052_v18 = vsel %vm2050_vm10, %v2047_v48, %v2049_v34 }
 0x30e   : > { %v2055_v42 = vsel %vm2033_vm6, %v2051_v46, 0.0  ;;  %v2056_v55 = vsel %vm2034_vm11, %v2052_v18, 0.0 }
 0x30f   : > { %v2057_v35 = vadd.f32 %v2055_v42, %v1643_v57  ;;  %v2058_v47 = vadd.f32 %v2056_v55, %v1644_v26 }
 0x311   : > { %v2059_v8 = vadd.f32 %v2057_v35, %v1850_v37  ;;  %v2060_v49 = vadd.f32 %v2058_v47, %v1851_v13 }
 0x313   : > { %v2067_v10 = vadd.f32 %v3695_v58, %v2059_v8  ;;  %v2068_v52 = vadd.f32 %v3695_v58, %v2060_v49  ;;  %v2079_v58 = vld [vmem:[%s3799_s8] sm:$0xf] }
 0x315   : > { %v2069_v28 = vmul.f32 %v2067_v10, %v3837_v17  ;;  %v2070_v31 = vmul.f32 %v2068_v52, %v3838_v51 }
 0x317   : > { %v2071_v41 = vsel %vm416_vm0, %v2069_v28, 0.0  ;;  %v2072_v54 = vsel %vm416_vm0, %v2070_v31, 0.0 }
 0x318   : > { %v2073_v2 = vadd.f32 %v2072_v54, %v2071_v41 }
 0x31a   : > { %2074 = vadd.xlane.f32.xlu1 %v2073_v2 }
 0x3a7   : > { %v2075_v4 = vpop.xlane.xlu1 %2074 }
 0x3a8   : > { %v2077_v15 = vmul.f32 0.00390625, %v2075_v4 }
 0x3aa   : > { %2363 = vmatpush3.msk.msra.mxu1 %vm416_vm0, %v2077_v15 }
 0x3ab   : > { %2365 = vmatmul.mubr.msk.f32.vlgmr.msra.gmra.mrb[0].mxu1 %vm505_vm1, %v2078_v25 }
 0x47e   : > { %v2152_v12 = vpop.f32.mrb[0].mxu1 }
 0x47f   : > { %v2153_v40 = vadd.f32 %v2152_v12, %v2079_v58  ;;  %v2366_v50 = vpop.f32.mrb[1].mxu1 }
 0x481   : > { %2158 = vperm.xlu0 %2522, %v2153_v40  }
 0x485   : > { %2167 = vperm.xlu0 %2522, %v2164_v61  }
 0x489   : > { %2253 = vperm.xlu0 %2522, %v2250_v33  }
 0x500   : > { %v2159_v30 = vpop.permute.xlu0 %2158 }
 0x501   : > { %v2161_v14 = vmul.f32 %v2159_v30, %v2069_v28  ;;  %v2162_v32 = vmul.f32 %v2159_v30, %v2070_v31 }
 0x503   : > { %2350 = vmatprep.subr.msk.mxu0 %vm416_vm0, %v2162_v32 }
 0x504   : > { %2351 = vmatpush1.msk.msra.mxu0 %vm416_vm0, %v2161_v14  ;;  %v2168_v23 = vpop.permute.xlu0 %2167 }
 0x505   : > { %2352 = vmatmul.mubr.msk.f32.vlgmr.msra.gmra.mrb[2].mxu0 %vm505_vm1, %v2163_v20 }
 0x508   : > { %v2254_v1 = vpop.permute.xlu0 %2253 }
 0x5d8   : > { %v2245_v0 = vpop.f32.mrb[2].mxu0 }
 0x5d9   : > { %v2246_v60 = vadd.f32 %v2245_v0, %v2168_v23  ;;  %v2247_v36 = vpop.f32.mrb[3].mxu0 }
 0x5da   : > { %v2248_v44 = vadd.f32 %v2247_v36, %v2168_v23 }
 0x5db   : > { %v2256_v27 = vmul.f32 %v2254_v1, %v2246_v60 }
 0x5dc   : > { %v2257_v3 = vmul.f32 %v2254_v1, %v2248_v44 }
 0x5de   : > { %v2260_v6 = vcombine.low %v2256_v27, %v2257_v3 }
 0x5e0   : > { %v2262_v9 = vadd.f32 %v2528_v43, %v2260_v6 }
 0x5e2   : > { %2263 = vst [vmem:[%s406_s16] sm:$0xff] %v2262_v9 }
 0x5e3   : > { %2542 = shalt.err (!%p2539_p3)
}
 0x5e4   : > { %s2543_s26 = scalar_lea.hbm %s3749_s20, 128  ;;  %s2547_s19 = scalar_lea.hbm %s3803_s12, 256 }
 0x5e5   : > { %p2544_p4 = scmp.ne.s32.totalorder %s3749_s20, %s2543_s26  ;;  %p2548_p9 = scmp.lt.u32.totalorder %s3749_s20, %s3803_s12 }
 0x5e6   : > { %p2549_p10 = scmp.lt.u32.totalorder %s2547_s19, %s2543_s26  ;;  %p2551_p12 = scmp.lt.u32.totalorder %s2543_s26, %s3749_s20 }
 0x5e7   : > { %p2545_p7 = pnand %p2544_p4, %p2761_p5 }
 0x5e8   : > { %p2550_p11 = por %p2549_p10, %p2548_p9 }
 0x5e9   : > { %p2546_p8 = pneg %p2545_p7 }
 0x5ea   : > { %p2552_p13 = por %p2551_p12, %p2550_p11 }
 0x5ec   : > { %p2553_p0 = pnand %p2552_p13, %p2546_p8 }
 0x5ee   : > { %2556 = shalt.err (!%p2553_p0)
}
 0x5ef   : > { %2367 = dma.vmem_to_hbm [thread:$0]  (%p2761_p5), %s3751_s17, 128, %s3749_s20, %s2265_s0  }
 0x5f0 PF: > { %p2373_p1 = scmp.ge.s32.totalorder %s2591_s24, 2  ;;  %s2291_s1 = sand.u32 1, %s2579_s21  }
 0x5f1   : > { %s2292_s18 = scalar_lea.sflag [#allocation4], %s2291_s1 }
 0x5f2   : > { %p2370_p2 = pnand %p2373_p1, %p2765_p6 }
 0x5f4   : > { %2574 = dma.done.wait (!%p2370_p2), %s2292_s18, 128  }
 0x5f5   : > { %2576 = vsyncadd (!%p2370_p2), %s2292_s18, 4294967168  ;;  %p22_p3 = scmp.ge.s32.totalorder %s2748_s27, 4   ;;  %s3840_s21 = smov %s2583_s22 }
 0x5f6   : > { %s3841_s22 = smov %s2587_s23  ;;  %s3842_s23 = smov %s2759_s30 }
 0x5f7   : > { %s3843_s24 = smov %s2748_s27  ;;  %24 = sbr.rel (!%p22_p3) target bundleno = 6 (0x6), region = 103 }
 0x5fe   :  { %2297 = vsyncpa [#allocation4], 1 }
 0x5ff   :  { %2299 = vsyncpa [#allocation4 + $0x1], 1 }

</bundles_post_ra>
